<compile_context>
chip_gen: v7x
topology: tpu7x:2x2x1
jax: 0.10.0
libtpu: 0.0.40
codegen_flags: <defaults>
</compile_context>

<pallas_src>
import jax
import jax.numpy as jnp
from jax.experimental import pallas as pl
from jax.experimental.pallas import tpu as pltpu

IN_FEATURES = 27
IN_PAD = 32               # 27 zero-padded to 32 (exact: extra W1 columns are zero)
DEFAULT_BLOCK_B = 2048    # max batch tile (rows); ~10 MiB live intermediates
VMEM_LIMIT_BYTES = 32 * 1024 * 1024


def _round_up(n, m):
    return (n + m - 1) // m * m


def mlp_kernel(x_ref, w1t_ref, b1_ref, w2t_ref, b2_ref,
               w3t_ref, b3_ref, w4t_ref, b4_ref, o_ref):
    bf16, f32 = jnp.bfloat16, jnp.float32
    # Feature-major (transposed) dataflow: weights are the MXU LHS, the batch
    # rides on the lane axis (tb, a multiple of 128) -> no transposes, all
    # intermediates lane-dense, f32 accumulation throughout.
    h = jnp.dot(w1t_ref[...], x_ref[...], preferred_element_type=f32)        # (64,  tb)
    h = jnp.maximum(h + b1_ref[...], 0.0)
    h = jnp.dot(w2t_ref[...], h.astype(bf16), preferred_element_type=f32)    # (256, tb)
    h = jnp.maximum(h + b2_ref[...], 0.0)
    h = jnp.dot(w3t_ref[...], h.astype(bf16), preferred_element_type=f32)    # (512, tb)
    h = jnp.maximum(h + b3_ref[...], 0.0)
    z = jnp.dot(w4t_ref[...], h.astype(bf16), preferred_element_type=f32)    # (1,   tb)
    o_ref[...] = jax.nn.sigmoid(z + b4_ref[...])


def _resident_spec(a):
    """Full-array block with a constant index_map -> stays VMEM-resident."""
    nd = a.ndim
    return pl.BlockSpec(a.shape, lambda i, _nd=nd: (0,) * _nd)


def prepare_params(params):
    """PyTorch-layout f32 params -> kernel layout (bf16 transposed weights,
    padded W1ᵀ, column-vector f32 biases)."""
    bf16 = jnp.bfloat16
    w1t = params["w1"].T                                         # (64, 27)
    w1t = jnp.pad(w1t, ((0, 0), (0, IN_PAD - IN_FEATURES)))      # (64, 32), zero cols
    return {
        "w1t": w1t.astype(bf16),            "b1": params["b1"].reshape(-1, 1),  # (64, 1)
        "w2t": params["w2"].T.astype(bf16), "b2": params["b2"].reshape(-1, 1),  # (256,1)
        "w3t": params["w3"].T.astype(bf16), "b3": params["b3"].reshape(-1, 1),  # (512,1)
        "w4t": params["w4"].T.astype(bf16), "b4": params["b4"].reshape(1, 1),   # (1,  1)
    }


def _choose_tile(B, block_b):
    """Batch tile: multiple of 128 lanes; prefer >=2 tiles once B > 256 so the
    grid can shard across both v7x TensorCores; cap at block_b for VMEM."""
    bp128 = _round_up(B, 128)
    if bp128 > 256:
        tb = min(block_b, _round_up(pl.cdiv(bp128, 2), 128))
    else:
        tb = bp128
    bp = _round_up(B, tb)
    return tb, bp


def mlp_forward(x, kparams, *, block_b=DEFAULT_BLOCK_B):
    """x: [B, ...] (flattens to 27 features); kparams from prepare_params.
    Returns [B, 1] f32."""
    B = x.shape[0]
    x = x.reshape(B, -1).astype(jnp.float32)             # nn.Flatten
    assert x.shape[1] == IN_FEATURES

    tb, Bp = _choose_tile(B, block_b)
    grid = (Bp // tb,)

    # Fused preprocessing: pad features 27->32 and batch B->Bp, transpose to
    # feature-major, cast to bf16 (halves x HBM traffic into the kernel).
    xT = jnp.pad(x, ((0, Bp - B), (0, IN_PAD - IN_FEATURES))).T.astype(jnp.bfloat16)

    out = pl.pallas_call(
        mlp_kernel,
        out_shape=jax.ShapeDtypeStruct((1, Bp), jnp.float32),
        grid=grid,
        in_specs=[
            pl.BlockSpec((IN_PAD, tb), lambda i: (0, i)),   # xᵀ tiled over batch lanes
            _resident_spec(kparams["w1t"]), _resident_spec(kparams["b1"]),
            _resident_spec(kparams["w2t"]), _resident_spec(kparams["b2"]),
            _resident_spec(kparams["w3t"]), _resident_spec(kparams["b3"]),
            _resident_spec(kparams["w4t"]), _resident_spec(kparams["b4"]),
        ],
        out_specs=pl.BlockSpec((1, tb), lambda i: (0, i)),  # lane-dense output row
        compiler_params=pltpu.CompilerParams(
            dimension_semantics=("parallel",),
            vmem_limit_bytes=VMEM_LIMIT_BYTES,
        ),
    )(xT, kparams["w1t"], kparams["b1"], kparams["w2t"], kparams["b2"],
      kparams["w3t"], kparams["b3"], kparams["w4t"], kparams["b4"])

    return out[0, :B].reshape(B, 1)


def init_params(key):
    """Deterministic init mimicking PyTorch nn.Linear default U(-1/sqrt(in), 1/sqrt(in))."""
    dims = [(27, 64), (64, 256), (256, 512), (512, 1)]
    params = {}
    for i, (fan_in, fan_out) in enumerate(dims, start=1):
        key, kw, kb = jax.random.split(key, 3)
        bound = 1.0 / jnp.sqrt(fan_in)
        params[f"w{i}"] = jax.random.uniform(
            kw, (fan_in, fan_out), jnp.float32, minval=-bound, maxval=bound)
        params[f"b{i}"] = jax.random.uniform(
            kb, (1, fan_out), jnp.float32, minval=-bound, maxval=bound)
    return params


def reference_forward_f32(x_flat, params):
    """Exact f32 semantics of the PyTorch module."""
    h = jnp.maximum(x_flat @ params["w1"] + params["b1"], 0.0)
    h = jnp.maximum(h @ params["w2"] + params["b2"], 0.0)
    h = jnp.maximum(h @ params["w3"] + params["b3"], 0.0)
    return jax.nn.sigmoid(h @ params["w4"] + params["b4"])


def reference_forward_bf16(x_flat, params):
    """Pure-JAX emulation of the kernel numerics (bf16 operands, f32 accumulation)."""
    bf16, f32 = jnp.bfloat16, jnp.float32

    def lin(h, w, b):
        return jnp.dot(h.astype(bf16), w.astype(bf16), preferred_element_type=f32) + b

    h = jnp.maximum(lin(x_flat, params["w1"], params["b1"]), 0.0)
    h = jnp.maximum(lin(h, params["w2"], params["b2"]), 0.0)
    h = jnp.maximum(lin(h, params["w3"], params["b3"]), 0.0)
    return jax.nn.sigmoid(lin(h, params["w4"], params["b4"]))


if __name__ == "__main__":
    key = jax.random.PRNGKey(0)
    key, kx = jax.random.split(key)

    params = init_params(key)
    kparams = prepare_params(params)

    # Small input that flattens to 27 features (e.g. [B, 3, 3, 3]).
    B = 8
    x_raw = jax.random.normal(kx, (B, 3, 3, 3), dtype=jnp.float32)

    out = mlp_forward(x_raw, kparams)
    out = jax.block_until_ready(out)
    assert out.shape == (B, 1)

    x_flat = x_raw.reshape(B, -1)
    ref_bf16 = reference_forward_bf16(x_flat, params)
    ref_f32 = reference_forward_f32(x_flat, params)
    assert jnp.allclose(out, ref_bf16, atol=1e-3, rtol=1e-3), "mismatch vs bf16-emulated reference"
    assert jnp.allclose(out, ref_f32, atol=5e-2), "mismatch vs f32 reference"

    # Exercise the multi-tile grid (2 tiles of 512 rows) and batch-padding path.
    key, kx2 = jax.random.split(key)
    B2 = 1000
    x2 = jax.random.normal(kx2, (B2, 27), dtype=jnp.float32)
    out2 = jax.block_until_ready(mlp_forward(x2, kparams))
    assert out2.shape == (B2, 1)
    assert jnp.allclose(out2, reference_forward_bf16(x2, params), atol=1e-3, rtol=1e-3), \
        "mismatch vs bf16-emulated reference (gridded batch)"

    print("KERNEL_OK")
</pallas_src>

<mosaic_0001>
module attributes {stable_mosaic.version = 11 : i64} {
  func.func @mlp_kernel(%arg0: i32, %arg1: memref<32x128xbf16, #tpu.memory_space<vmem>>, %arg2: memref<64x32xbf16, #tpu.memory_space<vmem>>, %arg3: memref<64x1xf32, #tpu.memory_space<vmem>>, %arg4: memref<256x64xbf16, #tpu.memory_space<vmem>>, %arg5: memref<256x1xf32, #tpu.memory_space<vmem>>, %arg6: memref<512x256xbf16, #tpu.memory_space<vmem>>, %arg7: memref<512x1xf32, #tpu.memory_space<vmem>>, %arg8: memref<1x512xbf16, #tpu.memory_space<vmem>>, %arg9: memref<1x1xf32, #tpu.memory_space<vmem>>, %arg10: memref<1x128xf32, #tpu.memory_space<vmem>>) attributes {dimension_semantics = [#tpu.dimension_semantics<parallel>], iteration_bounds = array<i64: 1>, scalar_prefetch = 0 : i64, scratch_operands = 0 : i64, tpu.core_type = #tpu.core_type<tc>, window_params = [{transform_indices = @transform_0, window_bounds = array<i64: 32, 128>}, {pipeline_mode = #tpu.pipeline_mode<synchronous>, transform_indices = @transform_1, window_bounds = array<i64: 64, 32>}, {pipeline_mode = #tpu.pipeline_mode<synchronous>, transform_indices = @transform_2, window_bounds = array<i64: 64, 1>}, {pipeline_mode = #tpu.pipeline_mode<synchronous>, transform_indices = @transform_3, window_bounds = array<i64: 256, 64>}, {pipeline_mode = #tpu.pipeline_mode<synchronous>, transform_indices = @transform_4, window_bounds = array<i64: 256, 1>}, {pipeline_mode = #tpu.pipeline_mode<synchronous>, transform_indices = @transform_5, window_bounds = array<i64: 512, 256>}, {pipeline_mode = #tpu.pipeline_mode<synchronous>, transform_indices = @transform_6, window_bounds = array<i64: 512, 1>}, {pipeline_mode = #tpu.pipeline_mode<synchronous>, transform_indices = @transform_7, window_bounds = array<i64: 1, 512>}, {pipeline_mode = #tpu.pipeline_mode<synchronous>, transform_indices = @transform_8, window_bounds = array<i64: 1, 1>}, {transform_indices = @transform_9, window_bounds = array<i64: 1, 128>}]} {
    %c0 = arith.constant 0 : index
    %c0_0 = arith.constant 0 : index
    %0 = vector.load %arg2[%c0, %c0_0] : memref<64x32xbf16, #tpu.memory_space<vmem>>, vector<64x32xbf16>
    %c0_1 = arith.constant 0 : index
    %c0_2 = arith.constant 0 : index
    %1 = vector.load %arg1[%c0_1, %c0_2] : memref<32x128xbf16, #tpu.memory_space<vmem>>, vector<32x128xbf16>
    %cst = arith.constant dense<0.000000e+00> : vector<64x128xf32>
    %2 = tpu.matmul %0, %1, %cst {dimension_numbers = #tpu.dot_dimension_numbers<[1], [0], [0], [1], [0, 0, 1, 1], [], []>} : vector<64x32xbf16>, vector<32x128xbf16>, vector<64x128xf32> -> vector<64x128xf32>
    %c0_3 = arith.constant 0 : index
    %c0_4 = arith.constant 0 : index
    %3 = vector.load %arg3[%c0_3, %c0_4] : memref<64x1xf32, #tpu.memory_space<vmem>>, vector<64x1xf32>
    %4 = vector.broadcast %3 : vector<64x1xf32> to vector<64x128xf32>
    %5 = arith.addf %2, %4 : vector<64x128xf32>
    %cst_5 = arith.constant 0.000000e+00 : f32
    %6 = vector.broadcast %cst_5 : f32 to vector<64x128xf32>
    %7 = arith.maximumf %5, %6 : vector<64x128xf32>
    %c0_6 = arith.constant 0 : index
    %c0_7 = arith.constant 0 : index
    %8 = vector.load %arg4[%c0_6, %c0_7] : memref<256x64xbf16, #tpu.memory_space<vmem>>, vector<256x64xbf16>
    %9 = arith.truncf %7 : vector<64x128xf32> to vector<64x128xbf16>
    %cst_8 = arith.constant dense<0.000000e+00> : vector<256x128xf32>
    %10 = tpu.matmul %8, %9, %cst_8 {dimension_numbers = #tpu.dot_dimension_numbers<[1], [0], [0], [1], [0, 0, 1, 1], [], []>} : vector<256x64xbf16>, vector<64x128xbf16>, vector<256x128xf32> -> vector<256x128xf32>
    %c0_9 = arith.constant 0 : index
    %c0_10 = arith.constant 0 : index
    %11 = vector.load %arg5[%c0_9, %c0_10] : memref<256x1xf32, #tpu.memory_space<vmem>>, vector<256x1xf32>
    %12 = vector.broadcast %11 : vector<256x1xf32> to vector<256x128xf32>
    %13 = arith.addf %10, %12 : vector<256x128xf32>
    %cst_11 = arith.constant 0.000000e+00 : f32
    %14 = vector.broadcast %cst_11 : f32 to vector<256x128xf32>
    %15 = arith.maximumf %13, %14 : vector<256x128xf32>
    %c0_12 = arith.constant 0 : index
    %c0_13 = arith.constant 0 : index
    %16 = vector.load %arg6[%c0_12, %c0_13] : memref<512x256xbf16, #tpu.memory_space<vmem>>, vector<512x256xbf16>
    %17 = arith.truncf %15 : vector<256x128xf32> to vector<256x128xbf16>
    %cst_14 = arith.constant dense<0.000000e+00> : vector<512x128xf32>
    %18 = tpu.matmul %16, %17, %cst_14 {dimension_numbers = #tpu.dot_dimension_numbers<[1], [0], [0], [1], [0, 0, 1, 1], [], []>} : vector<512x256xbf16>, vector<256x128xbf16>, vector<512x128xf32> -> vector<512x128xf32>
    %c0_15 = arith.constant 0 : index
    %c0_16 = arith.constant 0 : index
    %19 = vector.load %arg7[%c0_15, %c0_16] : memref<512x1xf32, #tpu.memory_space<vmem>>, vector<512x1xf32>
    %20 = vector.broadcast %19 : vector<512x1xf32> to vector<512x128xf32>
    %21 = arith.addf %18, %20 : vector<512x128xf32>
    %cst_17 = arith.constant 0.000000e+00 : f32
    %22 = vector.broadcast %cst_17 : f32 to vector<512x128xf32>
    %23 = arith.maximumf %21, %22 : vector<512x128xf32>
    %c0_18 = arith.constant 0 : index
    %c0_19 = arith.constant 0 : index
    %24 = vector.load %arg8[%c0_18, %c0_19] : memref<1x512xbf16, #tpu.memory_space<vmem>>, vector<1x512xbf16>
    %25 = arith.truncf %23 : vector<512x128xf32> to vector<512x128xbf16>
    %cst_20 = arith.constant dense<0.000000e+00> : vector<1x128xf32>
    %26 = tpu.matmul %24, %25, %cst_20 {dimension_numbers = #tpu.dot_dimension_numbers<[1], [0], [0], [1], [0, 0, 1, 1], [], []>} : vector<1x512xbf16>, vector<512x128xbf16>, vector<1x128xf32> -> vector<1x128xf32>
    %c0_21 = arith.constant 0 : index
    %c0_22 = arith.constant 0 : index
    %27 = vector.load %arg9[%c0_21, %c0_22] : memref<1x1xf32, #tpu.memory_space<vmem>>, vector<1x1xf32>
    %28 = vector.broadcast %27 : vector<1x1xf32> to vector<1x128xf32>
    %29 = arith.addf %26, %28 : vector<1x128xf32>
    %30 = arith.negf %29 : vector<1x128xf32>
    %31 = math.exp %30 : vector<1x128xf32>
    %cst_23 = arith.constant 1.000000e+00 : f32
    %32 = vector.broadcast %cst_23 : f32 to vector<1x128xf32>
    %33 = arith.addf %32, %31 : vector<1x128xf32>
    %34 = arith.divf %32, %33 : vector<1x128xf32>
    %c0_24 = arith.constant 0 : index
    %c0_25 = arith.constant 0 : index
    %35 = vector.load %arg10[%c0_24, %c0_25] : memref<1x128xf32, #tpu.memory_space<vmem>>, vector<1x128xf32>
    tpu.vector_store %arg10[%c0_24, %c0_25], %34 {strides = array<i32>} : memref<1x128xf32, #tpu.memory_space<vmem>>, vector<1x128xf32>,
    return
  }
  func.func @transform_0(%arg0: i32) -> (i32, i32) {
    %c0_i32 = arith.constant 0 : i32
    %c0_i32_0 = arith.constant 0 : i32
    return %c0_i32, %arg0 : i32, i32
  }
  func.func @transform_1(%arg0: i32) -> (i32, i32) {
    %c0_i32 = arith.constant 0 : i32
    %c0_i32_0 = arith.constant 0 : i32
    %c0_i32_1 = arith.constant 0 : i32
    return %c0_i32, %c0_i32_0 : i32, i32
  }
  func.func @transform_2(%arg0: i32) -> (i32, i32) {
    %c0_i32 = arith.constant 0 : i32
    %c0_i32_0 = arith.constant 0 : i32
    %c0_i32_1 = arith.constant 0 : i32
    return %c0_i32, %c0_i32_0 : i32, i32
  }
  func.func @transform_3(%arg0: i32) -> (i32, i32) {
    %c0_i32 = arith.constant 0 : i32
    %c0_i32_0 = arith.constant 0 : i32
    %c0_i32_1 = arith.constant 0 : i32
    return %c0_i32, %c0_i32_0 : i32, i32
  }
  func.func @transform_4(%arg0: i32) -> (i32, i32) {
    %c0_i32 = arith.constant 0 : i32
    %c0_i32_0 = arith.constant 0 : i32
    %c0_i32_1 = arith.constant 0 : i32
    return %c0_i32, %c0_i32_0 : i32, i32
  }
  func.func @transform_5(%arg0: i32) -> (i32, i32) {
    %c0_i32 = arith.constant 0 : i32
    %c0_i32_0 = arith.constant 0 : i32
    %c0_i32_1 = arith.constant 0 : i32
    return %c0_i32, %c0_i32_0 : i32, i32
  }
  func.func @transform_6(%arg0: i32) -> (i32, i32) {
    %c0_i32 = arith.constant 0 : i32
    %c0_i32_0 = arith.constant 0 : i32
    %c0_i32_1 = arith.constant 0 : i32
    return %c0_i32, %c0_i32_0 : i32, i32
  }
  func.func @transform_7(%arg0: i32) -> (i32, i32) {
    %c0_i32 = arith.constant 0 : i32
    %c0_i32_0 = arith.constant 0 : i32
    %c0_i32_1 = arith.constant 0 : i32
    return %c0_i32, %c0_i32_0 : i32, i32
  }
  func.func @transform_8(%arg0: i32) -> (i32, i32) {
    %c0_i32 = arith.constant 0 : i32
    %c0_i32_0 = arith.constant 0 : i32
    %c0_i32_1 = arith.constant 0 : i32
    return %c0_i32, %c0_i32_0 : i32, i32
  }
  func.func @transform_9(%arg0: i32) -> (i32, i32) {
    %c0_i32 = arith.constant 0 : i32
    %c0_i32_0 = arith.constant 0 : i32
    return %c0_i32, %arg0 : i32, i32
  }
}

</mosaic_0001>

<bundles_post_ra>
// kernel: tpu_custom_call.1
= control target key start
LH: loop header
LB: loop body
LE: loop exit
PB: predicated region body
PF: predicated region fallthrough
CT: control target
= control target key end

     0   :  { %s3433_s0 = inlined_call_operand.vmem [shape: bf16[32,128], index: 0, kind: input, shape index: {}]   ;;  %s3434_s1 = inlined_call_operand.vmem [shape: bf16[64,32], index: 1, kind: input, shape index: {}]   ;;  %s3435_s2 = inlined_call_operand.vmem [shape: f32[64,1], index: 2, kind: input, shape index: {}]   ;;  %s3436_s3 = inlined_call_operand.vmem [shape: bf16[256,64], index: 3, kind: input, shape index: {}]   ;;  %s3437_s4 = inlined_call_operand.vmem [shape: f32[256,1], index: 4, kind: input, shape index: {}]   ;;  %s3438_s5 = inlined_call_operand.vmem [shape: bf16[512,256], index: 5, kind: input, shape index: {}]   ;;  %s3439_s6 = inlined_call_operand.vmem [shape: f32[512,1], index: 6, kind: input, shape index: {}]   ;;  %s3440_s7 = inlined_call_operand.vmem [shape: bf16[1,512], index: 7, kind: input, shape index: {}]   ;;  %s3441_s8 = inlined_call_operand.<no memory space> [shape: f32[1,1], index: 8, kind: input, shape index: {}]   ;;  %s3442_s9 = inlined_call_operand.hbm [shape: f32[1,128], index: 9, kind: output, shape index: {}]  }
   0x1   :  { %v14_v0 = vstv %s3441_s8 }
   0x2   :  { %15 = vst [vmem:[#allocation2] sm:$0x1] %v14_v0 }
   0x3   :  { %v50_v1 = vld [vmem:[%s3435_s2 + $0x10] sm:$0xff]  ;;  %v48_v2 = vld [vmem:[%s3435_s2] sm:$0xff]  ;;  %v2487_v3 = vmov 0   ;;  %v51_v5 = vld [vmem:[%s3435_s2 + $0x18] sm:$0xff]  ;;  %vm128_vm0 = vcmask 261120  }
   0x4   :  { %2340 = vset.pattern.permute.xlu1 %v2487_v3  ;;  %2339 = vset.pattern.permute.xlu0 %v2487_v3  ;;  %v2341_v4 = vld [vmem:[%s3433_s0] sm:$0xff]   ;;  %v49_v6 = vld [vmem:[%s3435_s2 + $0x8] sm:$0xff]  ;;  %v2345_v12 = vld [vmem:[%s3434_s1 + $0x10] sm:$0xff]  }
   0x5   :  { %68 = vperm.xlu1 %2340, %v50_v1   ;;  %58 = vperm.xlu0 %2339, %v48_v2   ;;  %v2342_v7 = vld [vmem:[%s3433_s0 + $0x8] sm:$0xff]   ;;  %v2343_v8 = vld [vmem:[%s3434_s1] sm:$0xff]   ;;  %v55_v13 = vld [vmem:[%s3435_s2 + $0x38] sm:$0xff] }
   0x6   :  { %2252 = vmatprep.subr.bf16.mxu0 %v2341_v4  ;;  %v53_v9 = vld [vmem:[%s3435_s2 + $0x28] sm:$0xff]  ;;  %v52_v10 = vld [vmem:[%s3435_s2 + $0x20] sm:$0xff]  ;;  %2256 = vmatprep.mubr.msk.bf16.mxu0 %vm128_vm0, %v2343_v8  ;;  %v54_v14 = vld [vmem:[%s3435_s2 + $0x30] sm:$0xff] }
   0x7   :  { %2253 = vmatpush3.bf16.msra.mxu0 %v2341_v4  ;;  %v2344_v11 = vld [vmem:[%s3434_s1 + $0x8] sm:$0xff]   ;;  %v250_v16 = vld [vmem:[%s3437_s4] sm:$0xff]  ;;  %v2346_v17 = vld [vmem:[%s3434_s1 + $0x18] sm:$0xff]  }
   0x8   :  { %2254 = vmatprep.subr.bf16.mxu0 %v2342_v7  ;;  %v251_v15 = vld [vmem:[%s3437_s4 + $0x8] sm:$0xff]  ;;  %v253_v18 = vld [vmem:[%s3437_s4 + $0x18] sm:$0xff]  ;;  %v252_v19 = vld [vmem:[%s3437_s4 + $0x10] sm:$0xff] }
   0x9   :  { %73 = vperm.xlu1 %2340, %v51_v5   ;;  %63 = vperm.xlu0 %2339, %v49_v6   ;;  %v255_v20 = vld [vmem:[%s3437_s4 + $0x28] sm:$0xff]  ;;  %v254_v21 = vld [vmem:[%s3437_s4 + $0x20] sm:$0xff]  ;;  %v257_v22 = vld [vmem:[%s3437_s4 + $0x38] sm:$0xff] }
   0xa   :  { %v256_v23 = vld [vmem:[%s3437_s4 + $0x30] sm:$0xff]  ;;  %v259_v24 = vld [vmem:[%s3437_s4 + $0x48] sm:$0xff]  ;;  %v258_v25 = vld [vmem:[%s3437_s4 + $0x40] sm:$0xff] }
   0xb   :  { %2255 = vmatpush3.bf16.msra.mxu0 %v2342_v7  ;;  %v261_v26 = vld [vmem:[%s3437_s4 + $0x58] sm:$0xff]  ;;  %v260_v27 = vld [vmem:[%s3437_s4 + $0x50] sm:$0xff]  ;;  %v263_v28 = vld [vmem:[%s3437_s4 + $0x68] sm:$0xff] }
   0xc   :  { %1548 = vmatprep.subr.bf16.mxu0 %v2487_v3  ;;  %v262_v29 = vld [vmem:[%s3437_s4 + $0x60] sm:$0xff]  ;;  %v265_v30 = vld [vmem:[%s3437_s4 + $0x78] sm:$0xff]  ;;  %v264_v31 = vld [vmem:[%s3437_s4 + $0x70] sm:$0xff] }
   0xd   :  { %83 = vperm.xlu1 %2340, %v53_v9   ;;  %78 = vperm.xlu0 %2339, %v52_v10   ;;  %v267_v32 = vld [vmem:[%s3437_s4 + $0x88] sm:$0xff]  ;;  %v266_v33 = vld [vmem:[%s3437_s4 + $0x80] sm:$0xff]  ;;  %v269_v34 = vld [vmem:[%s3437_s4 + $0x98] sm:$0xff] }
   0xe   :  { %2257 = vmatmul.mubr.msk.bf16.vlgmr.msra.gmra.mrb[0].mxu0 %vm128_vm0, %v2344_v11  ;;  %v268_v35 = vld [vmem:[%s3437_s4 + $0x90] sm:$0xff]  ;;  %v271_v36 = vld [vmem:[%s3437_s4 + $0xa8] sm:$0xff]  ;;  %v270_v37 = vld [vmem:[%s3437_s4 + $0xa0] sm:$0xff] }
   0xf   :  { %2260 = vmatprep.mubr.msk.bf16.mxu0 %vm128_vm0, %v2345_v12  ;;  %v273_v38 = vld [vmem:[%s3437_s4 + $0xb8] sm:$0xff]  ;;  %v272_v39 = vld [vmem:[%s3437_s4 + $0xb0] sm:$0xff]  ;;  %v275_v40 = vld [vmem:[%s3437_s4 + $0xc8] sm:$0xff] }
  0x10   :  { %v274_v41 = vld [vmem:[%s3437_s4 + $0xc0] sm:$0xff]  ;;  %v277_v42 = vld [vmem:[%s3437_s4 + $0xd8] sm:$0xff]  ;;  %v276_v43 = vld [vmem:[%s3437_s4 + $0xd0] sm:$0xff] }
  0x11   :  { %93 = vperm.xlu1 %2340, %v55_v13   ;;  %88 = vperm.xlu0 %2339, %v54_v14   ;;  %v279_v44 = vld [vmem:[%s3437_s4 + $0xe8] sm:$0xff]  ;;  %v278_v45 = vld [vmem:[%s3437_s4 + $0xe0] sm:$0xff] }
  0x15   :  { %289 = vperm.xlu1 %2340, %v251_v15   ;;  %284 = vperm.xlu0 %2339, %v250_v16  }
  0x16   :  { %2261 = vmatmul.mubr.msk.bf16.gmra.mrb[4].mxu0 %vm128_vm0, %v2346_v17 }
  0x19   :  { %299 = vperm.xlu1 %2340, %v253_v18   ;;  %294 = vperm.xlu0 %2339, %v252_v19  }
  0x1d   :  { %309 = vperm.xlu1 %2340, %v255_v20   ;;  %304 = vperm.xlu0 %2339, %v254_v21  }
  0x21   :  { %319 = vperm.xlu1 %2340, %v257_v22   ;;  %314 = vperm.xlu0 %2339, %v256_v23  }
  0x25   :  { %329 = vperm.xlu1 %2340, %v259_v24   ;;  %324 = vperm.xlu0 %2339, %v258_v25  }
  0x29   :  { %339 = vperm.xlu1 %2340, %v261_v26   ;;  %334 = vperm.xlu0 %2339, %v260_v27  }
  0x2d   :  { %349 = vperm.xlu1 %2340, %v263_v28   ;;  %344 = vperm.xlu0 %2339, %v262_v29  }
  0x31   :  { %359 = vperm.xlu1 %2340, %v265_v30   ;;  %354 = vperm.xlu0 %2339, %v264_v31  }
  0x35   :  { %369 = vperm.xlu1 %2340, %v267_v32   ;;  %364 = vperm.xlu0 %2339, %v266_v33  }
  0x39   :  { %379 = vperm.xlu1 %2340, %v269_v34   ;;  %374 = vperm.xlu0 %2339, %v268_v35  }
  0x3d   :  { %389 = vperm.xlu1 %2340, %v271_v36   ;;  %384 = vperm.xlu0 %2339, %v270_v37  }
  0x41   :  { %399 = vperm.xlu1 %2340, %v273_v38   ;;  %394 = vperm.xlu0 %2339, %v272_v39  }
  0x45   :  { %409 = vperm.xlu1 %2340, %v275_v40   ;;  %404 = vperm.xlu0 %2339, %v274_v41  }
  0x49   :  { %419 = vperm.xlu1 %2340, %v277_v42   ;;  %414 = vperm.xlu0 %2339, %v276_v43  }
  0x4a   :  { %16 = vsyncpa [#allocation4], 0  ;;  %v281_v46 = vld [vmem:[%s3437_s4 + $0xf8] sm:$0xff]  ;;  %v280_v47 = vld [vmem:[%s3437_s4 + $0xf0] sm:$0xff]  ;;  %vm522_vm1 = vcmask 523264  }
  0x4b   :  { %v861_v48 = vld [vmem:[%s3439_s6 + $0x88] sm:$0xff]  ;;  %v860_v49 = vld [vmem:[%s3439_s6 + $0x80] sm:$0xff]  ;;  %v863_v52 = vld [vmem:[%s3439_s6 + $0x98] sm:$0xff] }
  0x4c   :  { %v845_v50 = vld [vmem:[%s3439_s6 + $0x8] sm:$0xff]  ;;  %v844_v51 = vld [vmem:[%s3439_s6] sm:$0xff]  ;;  %v862_v53 = vld [vmem:[%s3439_s6 + $0x90] sm:$0xff] }
  0x4d   :  { %429 = vperm.xlu1 %2340, %v279_v44   ;;  %424 = vperm.xlu0 %2339, %v278_v45   ;;  %v847_v54 = vld [vmem:[%s3439_s6 + $0x18] sm:$0xff]  ;;  %v846_v55 = vld [vmem:[%s3439_s6 + $0x10] sm:$0xff]  ;;  %v865_v56 = vld [vmem:[%s3439_s6 + $0xa8] sm:$0xff] }
  0x4e   :  { %v864_v57 = vld [vmem:[%s3439_s6 + $0xa0] sm:$0xff]  ;;  %v849_v58 = vld [vmem:[%s3439_s6 + $0x28] sm:$0xff]  ;;  %v867_v60 = vld [vmem:[%s3439_s6 + $0xb8] sm:$0xff] }
  0x4f   :  { %v848_v59 = vld [vmem:[%s3439_s6 + $0x20] sm:$0xff]  ;;  %v866_v61 = vld [vmem:[%s3439_s6 + $0xb0] sm:$0xff]  ;;  %v851_v62 = vld [vmem:[%s3439_s6 + $0x38] sm:$0xff] }
  0x50   :  { %v850_v63 = vld [vmem:[%s3439_s6 + $0x30] sm:$0xff]  ;;  %v869_v0 = vld [vmem:[%s3439_s6 + $0xc8] sm:$0xff]  ;;  %v868_v1 = vld [vmem:[%s3439_s6 + $0xc0] sm:$0xff] }
  0x51   :  { %439 = vperm.xlu1 %2340, %v281_v46   ;;  %434 = vperm.xlu0 %2339, %v280_v47   ;;  %v853_v2 = vld [vmem:[%s3439_s6 + $0x48] sm:$0xff]  ;;  %v852_v4 = vld [vmem:[%s3439_s6 + $0x40] sm:$0xff]  ;;  %v871_v6 = vld [vmem:[%s3439_s6 + $0xd8] sm:$0xff] }
  0x52   :  { %v2347_v5 = vld [vmem:[%s3436_s3] sm:$0xff]   ;;  %v870_v7 = vld [vmem:[%s3439_s6 + $0xd0] sm:$0xff]  ;;  %v855_v8 = vld [vmem:[%s3439_s6 + $0x58] sm:$0xff] }
  0x53   :  { %2272 = vmatprep.mubr.msk.bf16.mxu1 %vm522_vm1, %v2347_v5  ;;  %v854_v9 = vld [vmem:[%s3439_s6 + $0x50] sm:$0xff]  ;;  %v873_v10 = vld [vmem:[%s3439_s6 + $0xe8] sm:$0xff]  ;;  %v872_v11 = vld [vmem:[%s3439_s6 + $0xe0] sm:$0xff] }
  0x54   :  { %v857_v12 = vld [vmem:[%s3439_s6 + $0x68] sm:$0xff]  ;;  %v856_v13 = vld [vmem:[%s3439_s6 + $0x60] sm:$0xff]  ;;  %v875_v14 = vld [vmem:[%s3439_s6 + $0xf8] sm:$0xff] }
  0x55   :  { %995 = vperm.xlu1 %2340, %v861_v48   ;;  %990 = vperm.xlu0 %2339, %v860_v49   ;;  %v874_v15 = vld [vmem:[%s3439_s6 + $0xf0] sm:$0xff]  ;;  %v859_v16 = vld [vmem:[%s3439_s6 + $0x78] sm:$0xff]  ;;  %v893_v18 = vld [vmem:[%s3439_s6 + $0x188] sm:$0xff] }
  0x56   :  { %v858_v17 = vld [vmem:[%s3439_s6 + $0x70] sm:$0xff]  ;;  %v892_v19 = vld [vmem:[%s3439_s6 + $0x180] sm:$0xff]  ;;  %v877_v20 = vld [vmem:[%s3439_s6 + $0x108] sm:$0xff] }
  0x57   :  { %v876_v21 = vld [vmem:[%s3439_s6 + $0x100] sm:$0xff]  ;;  %v895_v22 = vld [vmem:[%s3439_s6 + $0x198] sm:$0xff]  ;;  %v894_v23 = vld [vmem:[%s3439_s6 + $0x190] sm:$0xff] }
  0x58   :  { %v879_v24 = vld [vmem:[%s3439_s6 + $0x118] sm:$0xff]  ;;  %v878_v25 = vld [vmem:[%s3439_s6 + $0x110] sm:$0xff]  ;;  %v897_v26 = vld [vmem:[%s3439_s6 + $0x1a8] sm:$0xff] }
  0x59   :  { %915 = vperm.xlu1 %2340, %v845_v50   ;;  %910 = vperm.xlu0 %2339, %v844_v51   ;;  %v896_v27 = vld [vmem:[%s3439_s6 + $0x1a0] sm:$0xff]  ;;  %v881_v28 = vld [vmem:[%s3439_s6 + $0x128] sm:$0xff]  ;;  %v899_v30 = vld [vmem:[%s3439_s6 + $0x1b8] sm:$0xff] }
  0x5a   :  { %v880_v29 = vld [vmem:[%s3439_s6 + $0x120] sm:$0xff]  ;;  %v898_v31 = vld [vmem:[%s3439_s6 + $0x1b0] sm:$0xff]  ;;  %v883_v32 = vld [vmem:[%s3439_s6 + $0x138] sm:$0xff] }
  0x5b   :  { %v882_v33 = vld [vmem:[%s3439_s6 + $0x130] sm:$0xff]  ;;  %v901_v34 = vld [vmem:[%s3439_s6 + $0x1c8] sm:$0xff]  ;;  %v900_v35 = vld [vmem:[%s3439_s6 + $0x1c0] sm:$0xff] }
  0x5c   :  { %v885_v36 = vld [vmem:[%s3439_s6 + $0x148] sm:$0xff]  ;;  %v884_v37 = vld [vmem:[%s3439_s6 + $0x140] sm:$0xff]  ;;  %v903_v38 = vld [vmem:[%s3439_s6 + $0x1d8] sm:$0xff] }
  0x5d   :  { %1005 = vperm.xlu1 %2340, %v863_v52   ;;  %1000 = vperm.xlu0 %2339, %v862_v53   ;;  %v902_v39 = vld [vmem:[%s3439_s6 + $0x1d0] sm:$0xff]  ;;  %v887_v40 = vld [vmem:[%s3439_s6 + $0x158] sm:$0xff]  ;;  %v905_v42 = vld [vmem:[%s3439_s6 + $0x1e8] sm:$0xff] }
  0x5e   :  { %v886_v41 = vld [vmem:[%s3439_s6 + $0x150] sm:$0xff]  ;;  %v904_v43 = vld [vmem:[%s3439_s6 + $0x1e0] sm:$0xff]  ;;  %v889_v46 = vld [vmem:[%s3439_s6 + $0x168] sm:$0xff] }
  0x5f   :  { %v888_v47 = vld [vmem:[%s3439_s6 + $0x160] sm:$0xff]  ;;  %v907_v49 = vld [vmem:[%s3439_s6 + $0x1f8] sm:$0xff]  ;;  %v906_v50 = vld [vmem:[%s3439_s6 + $0x1f0] sm:$0xff] }
  0x60   :  { %v891_v52 = vld [vmem:[%s3439_s6 + $0x178] sm:$0xff]  ;;  %v890_v53 = vld [vmem:[%s3439_s6 + $0x170] sm:$0xff] }
  0x61   :  { %925 = vperm.xlu1 %2340, %v847_v54   ;;  %920 = vperm.xlu0 %2339, %v846_v55  }
  0x65   :  { %1015 = vperm.xlu1 %2340, %v865_v56   ;;  %1010 = vperm.xlu0 %2339, %v864_v57   ;;  %v1934_v56 = vld [vmem:[#allocation2] sm:$0x1] }
  0x69   :  { %935 = vperm.xlu1 %2340, %v849_v58   ;;  %930 = vperm.xlu0 %2339, %v848_v59  }
  0x6d   :  { %1025 = vperm.xlu1 %2340, %v867_v60   ;;  %1020 = vperm.xlu0 %2339, %v866_v61  }
  0x71   :  { %945 = vperm.xlu1 %2340, %v851_v62   ;;  %940 = vperm.xlu0 %2339, %v850_v63  }
  0x75   :  { %1035 = vperm.xlu1 %2340, %v869_v0   ;;  %1030 = vperm.xlu0 %2339, %v868_v1  }
  0x79   :  { %955 = vperm.xlu1 %2340, %v853_v2   ;;  %950 = vperm.xlu0 %2339, %v852_v4  }
  0x7d   :  { %1045 = vperm.xlu1 %2340, %v871_v6   ;;  %1040 = vperm.xlu0 %2339, %v870_v7  }
  0x81   :  { %965 = vperm.xlu1 %2340, %v855_v8   ;;  %960 = vperm.xlu0 %2339, %v854_v9  }
  0x84   :  { %v59_v44 = vpop.permute.xlu0 %58  ;;  %v69_v45 = vpop.permute.xlu1 %68 }
  0x85   :  { %1055 = vperm.xlu1 %2340, %v873_v10   ;;  %1050 = vperm.xlu0 %2339, %v872_v11  }
  0x88   :  { %v64_v48 = vpop.permute.xlu0 %63  ;;  %v74_v51 = vpop.permute.xlu1 %73 }
  0x89   :  { %975 = vperm.xlu1 %2340, %v857_v12   ;;  %970 = vperm.xlu0 %2339, %v856_v13  }
  0x8c   :  { %v79_v54 = vpop.permute.xlu0 %78  ;;  %v84_v55 = vpop.permute.xlu1 %83 }
  0x8d   :  { %1065 = vperm.xlu1 %2340, %v875_v14   ;;  %1060 = vperm.xlu0 %2339, %v874_v15  }
  0x90   :  { %v89_v57 = vpop.permute.xlu0 %88  ;;  %v94_v12 = vpop.permute.xlu1 %93 }
  0x91   :  { %985 = vperm.xlu1 %2340, %v859_v16   ;;  %980 = vperm.xlu0 %2339, %v858_v17  }
  0x95   :  { %1155 = vperm.xlu1 %2340, %v893_v18   ;;  %1150 = vperm.xlu0 %2339, %v892_v19  }
  0x99   :  { %1075 = vperm.xlu1 %2340, %v877_v20   ;;  %1070 = vperm.xlu0 %2339, %v876_v21  }
  0x9d   :  { %1165 = vperm.xlu1 %2340, %v895_v22   ;;  %1160 = vperm.xlu0 %2339, %v894_v23  }
  0xa1   :  { %1085 = vperm.xlu1 %2340, %v879_v24   ;;  %1080 = vperm.xlu0 %2339, %v878_v25   ;;  %v2348_v24 = vld [vmem:[%s3436_s3 + $0x8] sm:$0xff]   ;;  %v2349_v25 = vld [vmem:[%s3436_s3 + $0x10] sm:$0xff]  }
  0xa5   :  { %1175 = vperm.xlu1 %2340, %v897_v26   ;;  %1170 = vperm.xlu0 %2339, %v896_v27   ;;  %v2350_v26 = vld [vmem:[%s3436_s3 + $0x18] sm:$0xff]   ;;  %v2351_v27 = vld [vmem:[%s3436_s3 + $0x20] sm:$0xff]  }
  0xa9   :  { %1095 = vperm.xlu1 %2340, %v881_v28   ;;  %1090 = vperm.xlu0 %2339, %v880_v29   ;;  %v2352_v28 = vld [vmem:[%s3436_s3 + $0x28] sm:$0xff]   ;;  %v2353_v29 = vld [vmem:[%s3436_s3 + $0x30] sm:$0xff]  }
  0xad   :  { %1185 = vperm.xlu1 %2340, %v899_v30   ;;  %1180 = vperm.xlu0 %2339, %v898_v31   ;;  %v2354_v30 = vld [vmem:[%s3436_s3 + $0x38] sm:$0xff]   ;;  %v2355_v31 = vld [vmem:[%s3436_s3 + $0x40] sm:$0xff]  }
  0xb1   :  { %1105 = vperm.xlu1 %2340, %v883_v32   ;;  %1100 = vperm.xlu0 %2339, %v882_v33   ;;  %v2356_v32 = vld [vmem:[%s3436_s3 + $0x48] sm:$0xff]   ;;  %v2357_v33 = vld [vmem:[%s3436_s3 + $0x50] sm:$0xff]  }
  0xb5   :  { %1195 = vperm.xlu1 %2340, %v901_v34   ;;  %1190 = vperm.xlu0 %2339, %v900_v35   ;;  %v2358_v34 = vld [vmem:[%s3436_s3 + $0x58] sm:$0xff]   ;;  %v2359_v35 = vld [vmem:[%s3436_s3 + $0x60] sm:$0xff]  }
  0xb9   :  { %1115 = vperm.xlu1 %2340, %v885_v36   ;;  %1110 = vperm.xlu0 %2339, %v884_v37   ;;  %v2360_v36 = vld [vmem:[%s3436_s3 + $0x68] sm:$0xff]   ;;  %v2361_v37 = vld [vmem:[%s3436_s3 + $0x70] sm:$0xff]  }
  0xbd   :  { %1205 = vperm.xlu1 %2340, %v903_v38   ;;  %1200 = vperm.xlu0 %2339, %v902_v39   ;;  %v2362_v38 = vld [vmem:[%s3436_s3 + $0x78] sm:$0xff]   ;;  %v2365_v39 = vld [vmem:[%s3438_s5 + $0x4] ss:$8 sps:$4 sm:$0xff]  }
  0xbe   :  { %1580 = vmatprep.mubr.bf16.mxu0 %v2365_v39 }
  0xc1   :  { %1125 = vperm.xlu1 %2340, %v887_v40   ;;  %1120 = vperm.xlu0 %2339, %v886_v41   ;;  %v2368_v40 = vld [vmem:[%s3438_s5 + $0x134] ss:$8 sps:$4 sm:$0xff]   ;;  %v285_v41 = vpop.permute.xlu0 %284 }
  0xc5   :  { %1215 = vperm.xlu1 %2340, %v905_v42   ;;  %1210 = vperm.xlu0 %2339, %v904_v43   ;;  %v290_v42 = vpop.permute.xlu1 %289  ;;  %v295_v43 = vpop.permute.xlu0 %294 }
  0xc9   :  { %1135 = vperm.xlu1 %2340, %v889_v46   ;;  %1130 = vperm.xlu0 %2339, %v888_v47  }
  0xcd   :  { %1225 = vperm.xlu1 %2340, %v907_v49   ;;  %1220 = vperm.xlu0 %2339, %v906_v50  }
  0xd1   :  { %1145 = vperm.xlu1 %2340, %v891_v52   ;;  %1140 = vperm.xlu0 %2339, %v890_v53  }
  0xd5   :  { %1937 = vperm.xlu0 %2339, %v1934_v56  }
  0xe1   :  { %v2258_v58 = vpop.f32.mrb[0].mxu0 }
  0xe2   :  { %v184_v59 = vadd.f32 %v2258_v58, %v69_v45  ;;  %v175_v60 = vpop.f32.mrb[1].mxu0  ;;  %v305_v45 = vpop.permute.xlu0 %304 }
  0xe3   :  { %v2259_v61 = vpop.f32.mrb[2].mxu0  ;;  %v176_v62 = vadd.f32 %v175_v60, %v59_v44  ;;  %v300_v44 = vpop.permute.xlu1 %299 }
  0xe4   :  { %v187_v63 = vadd.f32 %v2259_v61, %v74_v51  ;;  %v178_v0 = vpop.f32.mrb[3].mxu0  ;;  %v208_v1 = vmax.f32 %v184_v59, 0.0 }
  0xe5   :  { %v179_v4 = vadd.f32 %v178_v0, %v64_v48  ;;  %v206_v5 = vmax.f32 %v176_v62, 0.0 }
  0xe6   :  { %v209_v2 = vmax.f32 %v187_v63, 0.0  ;;  %v315_v47 = vpop.permute.xlu0 %314 }
  0xe7   :  { %v207_v7 = vmax.f32 %v179_v4, 0.0  ;;  %v310_v46 = vpop.permute.xlu1 %309 }
  0xe8   :  { %v247_v6 = vpack.c.bf16 %v209_v2, %v208_v1 }
  0xe9   :  { %v2262_v8 = vpop.f32.mrb[4].mxu0  ;;  %v246_v11 = vpack.c.bf16 %v207_v7, %v206_v5 }
  0xea   :  { %v200_v9 = vadd.f32 %v2262_v8, %v89_v57  ;;  %v191_v10 = vpop.f32.mrb[5].mxu0  ;;  %v325_v49 = vpop.permute.xlu0 %324 }
  0xeb   :  { %v2263_v13 = vpop.f32.mrb[6].mxu0  ;;  %v192_v14 = vadd.f32 %v191_v10, %v79_v54  ;;  %2264 = vmatprep.subr.bf16.mxu1 %v246_v11  ;;  %v320_v48 = vpop.permute.xlu1 %319 }
  0xec   :  { %v203_v15 = vadd.f32 %v2263_v13, %v94_v12  ;;  %v194_v16 = vpop.f32.mrb[7].mxu0  ;;  %2265 = vmatpush3.bf16.msra.mxu1 %v246_v11  ;;  %v212_v17 = vmax.f32 %v200_v9, 0.0 }
  0xed   :  { %v195_v19 = vadd.f32 %v194_v16, %v84_v55  ;;  %2266 = vmatprep.subr.bf16.mxu1 %v247_v6  ;;  %v210_v20 = vmax.f32 %v192_v14, 0.0 }
  0xee   :  { %v213_v18 = vmax.f32 %v203_v15, 0.0  ;;  %v335_v51 = vpop.permute.xlu0 %334 }
  0xef   :  { %v211_v22 = vmax.f32 %v195_v19, 0.0  ;;  %v330_v50 = vpop.permute.xlu1 %329 }
  0xf0   :  { %v249_v21 = vpack.c.bf16 %v213_v18, %v212_v17  ;;  %2267 = vmatpush3.bf16.msra.mxu1 %v247_v6 }
  0xf1   :  { %v248_v23 = vpack.c.bf16 %v211_v22, %v210_v20 }
  0xf2   :  { %v2951_v56 = vpop.permute.xlu0 %344 }
  0xf3   :  { %2268 = vmatprep.subr.bf16.mxu1 %v248_v23  ;;  %v340_v52 = vpop.permute.xlu1 %339 }
  0xf4   :  { %2269 = vmatpush3.bf16.msra.mxu1 %v248_v23 }
  0xf5   :  { %2270 = vmatprep.subr.bf16.mxu1 %v249_v21 }
  0xf6   :  { %v355_v5 = vpop.permute.xlu0 %354 }
  0xf7   :  { %v2953_v61 = vpop.permute.xlu1 %349 }
  0xf8   :  { %2271 = vmatpush3.bf16.msra.mxu1 %v249_v21 }
  0xf9   :  { %2304 = vmatprep.subr.bf16.mxu1 %v2487_v3 }
  0xfa   :  { %v2957_v18 = vpop.permute.xlu0 %364 }
  0xfb   :  { %2273 = vmatmul.mubr.msk.bf16.vlgmr.msra.gmra.mrb[0].mxu1 %vm522_vm1, %v2348_v24  ;;  %v360_v10 = vpop.permute.xlu1 %359 }
  0xfc   :  { %2276 = vmatprep.mubr.msk.bf16.mxu1 %vm522_vm1, %v2349_v25 }
  0xff   :  { %v2961_v22 = vpop.permute.xlu1 %369 }
 0x103   :  { %2277 = vmatmul.mubr.msk.bf16.gmra.mrb[4].mxu1 %vm522_vm1, %v2350_v26 }
 0x104   :  { %2280 = vmatprep.mubr.msk.bf16.mxu1 %vm522_vm1, %v2351_v27 }
 0x10b   :  { %2281 = vmatmul.mubr.msk.bf16.gmra.mrb[8].mxu1 %vm522_vm1, %v2352_v28 }
 0x10c   :  { %2284 = vmatprep.mubr.msk.bf16.mxu1 %vm522_vm1, %v2353_v29 }
 0x113   :  { %2285 = vmatmul.mubr.msk.bf16.gmra.mrb[12].mxu1 %vm522_vm1, %v2354_v30 }
 0x114   :  { %2288 = vmatprep.mubr.msk.bf16.mxu1 %vm522_vm1, %v2355_v31  ;;  %v375_v31 = vpop.permute.xlu0 %374 }
 0x11b   :  { %2289 = vmatmul.mubr.msk.bf16.gmra.mrb[16].mxu1 %vm522_vm1, %v2356_v32 }
 0x11c   :  { %2292 = vmatprep.mubr.msk.bf16.mxu1 %vm522_vm1, %v2357_v33 }
 0x123   :  { %2293 = vmatmul.mubr.msk.bf16.gmra.mrb[20].mxu1 %vm522_vm1, %v2358_v34 }
 0x124   :  { %2296 = vmatprep.mubr.msk.bf16.mxu1 %vm522_vm1, %v2359_v35  ;;  %v380_v35 = vpop.permute.xlu1 %379 }
 0x12b   :  { %2297 = vmatmul.mubr.msk.bf16.gmra.mrb[24].mxu1 %vm522_vm1, %v2360_v36 }
 0x12c   :  { %2300 = vmatprep.mubr.msk.bf16.mxu1 %vm522_vm1, %v2361_v37 }
 0x133   :  { %2301 = vmatmul.mubr.msk.bf16.gmra.mrb[28].mxu1 %vm522_vm1, %v2362_v38 }
 0x134   :  { %1732 = vmatprep.mubr.bf16.mxu1 %v2368_v40 }
 0x1ce   :  { %v2274_v53 = vpop.f32.mrb[0].mxu1 }
 0x1cf   :  { %v614_v54 = vadd.f32 %v2274_v53, %v295_v43  ;;  %v605_v55 = vpop.f32.mrb[1].mxu1  ;;  %v385_v43 = vpop.permute.xlu0 %384 }
 0x1d0   :  { %v606_v57 = vadd.f32 %v605_v55, %v285_v41  ;;  %v2275_v58 = vpop.f32.mrb[2].mxu1 }
 0x1d1   :  { %v617_v59 = vadd.f32 %v2275_v58, %v300_v44  ;;  %v608_v60 = vpop.f32.mrb[3].mxu1  ;;  %v734_v63 = vmax.f32 %v614_v54, 0.0 }
 0x1d2   :  { %v609_v62 = vadd.f32 %v608_v60, %v290_v42  ;;  %v732_v1 = vmax.f32 %v606_v57, 0.0 }
 0x1d3   :  { %v735_v0 = vmax.f32 %v617_v59, 0.0  ;;  %v395_v55 = vpop.permute.xlu0 %394 }
 0x1d4   :  { %v733_v2 = vmax.f32 %v609_v62, 0.0 }
 0x1d5   :  { %v829_v4 = vpack.c.bf16 %v735_v0, %v734_v63 }
 0x1d6   :  { %v828_v6 = vpack.c.bf16 %v733_v2, %v732_v1  ;;  %v2278_v7 = vpop.f32.mrb[4].mxu1 }
 0x1d7   :  { %v630_v8 = vadd.f32 %v2278_v7, %v315_v47  ;;  %v621_v9 = vpop.f32.mrb[5].mxu1 }
 0x1d8   :  { %v622_v11 = vadd.f32 %v621_v9, %v305_v45  ;;  %v2279_v12 = vpop.f32.mrb[6].mxu1  ;;  %1549 = vmatpush1.bf16.msra.mxu0 %v828_v6  ;;  %2320 = vmatpush1.bf16.msra.mxu1 %v828_v6 }
 0x1d9   :  { %v633_v13 = vadd.f32 %v2279_v12, %v320_v48  ;;  %v624_v14 = vpop.f32.mrb[7].mxu1  ;;  %1550 = vmatprep.subr.bf16.mxu0 %v2487_v3  ;;  %2305 = vmatprep.subr.bf16.mxu1 %v2487_v3  ;;  %v738_v16 = vmax.f32 %v630_v8, 0.0  ;;  %v390_v48 = vpop.permute.xlu1 %389 }
 0x1da   :  { %v625_v15 = vadd.f32 %v624_v14, %v310_v46  ;;  %v736_v19 = vmax.f32 %v622_v11, 0.0 }
 0x1db   :  { %v739_v17 = vmax.f32 %v633_v13, 0.0 }
 0x1dc   :  { %v737_v20 = vmax.f32 %v625_v15, 0.0  ;;  %1551 = vmatpush1.bf16.msra.mxu0 %v829_v4  ;;  %2321 = vmatpush1.bf16.msra.mxu1 %v829_v4 }
 0x1dd   :  { %v831_v21 = vpack.c.bf16 %v739_v17, %v738_v16  ;;  %1552 = vmatprep.subr.bf16.mxu0 %v2487_v3  ;;  %2306 = vmatprep.subr.bf16.mxu1 %v2487_v3  ;;  %v400_v60 = vpop.permute.xlu1 %399 }
 0x1de   :  { %v830_v23 = vpack.c.bf16 %v737_v20, %v736_v19  ;;  %v2282_v24 = vpop.f32.mrb[8].mxu1 }
 0x1df   :  { %v646_v25 = vadd.f32 %v2282_v24, %v335_v51  ;;  %v637_v26 = vpop.f32.mrb[9].mxu1 }
 0x1e0   :  { %v638_v27 = vadd.f32 %v637_v26, %v325_v49  ;;  %v2283_v28 = vpop.f32.mrb[10].mxu1  ;;  %1553 = vmatpush1.bf16.msra.mxu0 %v830_v23  ;;  %2322 = vmatpush1.bf16.msra.mxu1 %v830_v23 }
 0x1e1   :  { %v649_v29 = vadd.f32 %v2283_v28, %v340_v52  ;;  %v640_v30 = vpop.f32.mrb[11].mxu1  ;;  %1554 = vmatprep.subr.bf16.mxu0 %v2487_v3  ;;  %2307 = vmatprep.subr.bf16.mxu1 %v2487_v3  ;;  %v742_v33 = vmax.f32 %v646_v25, 0.0  ;;  %v410_v9 = vpop.permute.xlu1 %409 }
 0x1e2   :  { %v641_v32 = vadd.f32 %v640_v30, %v330_v50  ;;  %v740_v36 = vmax.f32 %v638_v27, 0.0 }
 0x1e3   :  { %v743_v34 = vmax.f32 %v649_v29, 0.0 }
 0x1e4   :  { %v741_v37 = vmax.f32 %v641_v32, 0.0  ;;  %1555 = vmatpush1.bf16.msra.mxu0 %v831_v21  ;;  %2323 = vmatpush1.bf16.msra.mxu1 %v831_v21 }
 0x1e5   :  { %v833_v38 = vpack.c.bf16 %v743_v34, %v742_v33  ;;  %1556 = vmatprep.subr.bf16.mxu0 %v2487_v3  ;;  %2308 = vmatprep.subr.bf16.mxu1 %v2487_v3 }
 0x1e6   :  { %v832_v39 = vpack.c.bf16 %v741_v37, %v740_v36  ;;  %v2286_v40 = vpop.f32.mrb[12].mxu1 }
 0x1e7   :  { %v662_v41 = vadd.f32 %v2286_v40, %v355_v5  ;;  %v653_v42 = vpop.f32.mrb[13].mxu1  ;;  %v405_v5 = vpop.permute.xlu0 %404 }
 0x1e8   :  { %v654_v44 = vadd.f32 %v653_v42, %v2951_v56  ;;  %v2287_v45 = vpop.f32.mrb[14].mxu1  ;;  %1557 = vmatpush1.bf16.msra.mxu0 %v832_v39  ;;  %2324 = vmatpush1.bf16.msra.mxu1 %v832_v39 }
 0x1e9   :  { %v665_v46 = vadd.f32 %v2287_v45, %v360_v10  ;;  %v656_v47 = vpop.f32.mrb[15].mxu1  ;;  %1558 = vmatprep.subr.bf16.mxu0 %v2487_v3  ;;  %2309 = vmatprep.subr.bf16.mxu1 %v2487_v3  ;;  %v746_v50 = vmax.f32 %v662_v41, 0.0 }
 0x1ea   :  { %v657_v49 = vadd.f32 %v656_v47, %v2953_v61  ;;  %v744_v52 = vmax.f32 %v654_v44, 0.0 }
 0x1eb   :  { %v747_v51 = vmax.f32 %v665_v46, 0.0 }
 0x1ec   :  { %v745_v53 = vmax.f32 %v657_v49, 0.0  ;;  %1559 = vmatpush1.bf16.msra.mxu0 %v833_v38  ;;  %2325 = vmatpush1.bf16.msra.mxu1 %v833_v38 }
 0x1ed   :  { %v835_v54 = vpack.c.bf16 %v747_v51, %v746_v50  ;;  %1560 = vmatprep.subr.bf16.mxu0 %v2487_v3  ;;  %2310 = vmatprep.subr.bf16.mxu1 %v2487_v3 }
 0x1ee   :  { %v834_v56 = vpack.c.bf16 %v745_v53, %v744_v52  ;;  %v2290_v57 = vpop.f32.mrb[16].mxu1 }
 0x1ef   :  { %v678_v58 = vadd.f32 %v2290_v57, %v375_v31  ;;  %v669_v59 = vpop.f32.mrb[17].mxu1 }
 0x1f0   :  { %v670_v62 = vadd.f32 %v669_v59, %v2957_v18  ;;  %v2291_v61 = vpop.f32.mrb[18].mxu1  ;;  %1561 = vmatpush1.bf16.msra.mxu0 %v834_v56  ;;  %2326 = vmatpush1.bf16.msra.mxu1 %v834_v56  ;;  %v415_v18 = vpop.permute.xlu0 %414  ;;  %v2363_v59 = vld [vmem:[%s3438_s5] ss:$8 sps:$4 sm:$0xff]  }
 0x1f1   :  { %v681_v63 = vadd.f32 %v2291_v61, %v380_v35  ;;  %v672_v0 = vpop.f32.mrb[19].mxu1  ;;  %1562 = vmatprep.subr.bf16.mxu0 %v2487_v3  ;;  %2311 = vmatprep.subr.bf16.mxu1 %v2487_v3  ;;  %v750_v2 = vmax.f32 %v678_v58, 0.0  ;;  %v2371_v61 = vld [vmem:[%s3438_s5 + $0x144] ss:$8 sps:$4 sm:$0xff]  }
 0x1f2   :  { %v673_v1 = vadd.f32 %v672_v0, %v2961_v22  ;;  %v748_v6 = vmax.f32 %v670_v62, 0.0  ;;  %v420_v22 = vpop.permute.xlu1 %419  ;;  %v2369_v62 = vld [vmem:[%s3438_s5 + $0x14] ss:$8 sps:$4 sm:$0xff]   ;;  %v2375_v0 = vld [vmem:[%s3438_s5 + $0x24] ss:$8 sps:$4 sm:$0xff]  }
 0x1f3   :  { %v751_v4 = vmax.f32 %v681_v63, 0.0  ;;  %v2374_v63 = vld [vmem:[%s3438_s5 + $0x140] ss:$8 sps:$4 sm:$0xff]  }
 0x1f4   :  { %v749_v7 = vmax.f32 %v673_v1, 0.0  ;;  %1563 = vmatpush1.bf16.msra.mxu0 %v835_v54  ;;  %2327 = vmatpush1.bf16.msra.mxu1 %v835_v54  ;;  %v425_v30 = vpop.permute.xlu0 %424  ;;  %v2377_v1 = vld [vmem:[%s3438_s5 + $0x154] ss:$8 sps:$4 sm:$0xff]  }
 0x1f5   :  { %v837_v8 = vpack.c.bf16 %v751_v4, %v750_v2  ;;  %1564 = vmatprep.subr.bf16.mxu0 %v2487_v3  ;;  %2312 = vmatprep.subr.bf16.mxu1 %v2487_v3  ;;  %v2379_v2 = vld [vmem:[%s3438_s5 + $0x20] ss:$8 sps:$4 sm:$0xff]   ;;  %v2380_v4 = vld [vmem:[%s3438_s5 + $0x150] ss:$8 sps:$4 sm:$0xff]  }
 0x1f6   :  { %v836_v10 = vpack.c.bf16 %v749_v7, %v748_v6  ;;  %v2294_v11 = vpop.f32.mrb[20].mxu1  ;;  %v430_v35 = vpop.permute.xlu1 %429  ;;  %v2383_v6 = vld [vmem:[%s3438_s5 + $0x164] ss:$8 sps:$4 sm:$0xff]   ;;  %v2385_v7 = vld [vmem:[%s3438_s5 + $0x30] ss:$8 sps:$4 sm:$0xff]  }
 0x1f7   :  { %v694_v12 = vadd.f32 %v2294_v11, %v395_v55  ;;  %v685_v13 = vpop.f32.mrb[21].mxu1  ;;  %v2391_v11 = vld [vmem:[%s3438_s5 + $0x40] ss:$8 sps:$4 sm:$0xff]  }
 0x1f8   :  { %v686_v14 = vadd.f32 %v685_v13, %v385_v43  ;;  %v2295_v15 = vpop.f32.mrb[22].mxu1  ;;  %1565 = vmatpush1.bf16.msra.mxu0 %v836_v10  ;;  %2328 = vmatpush1.bf16.msra.mxu1 %v836_v10  ;;  %v435_v42 = vpop.permute.xlu0 %434  ;;  %v2389_v10 = vld [vmem:[%s3438_s5 + $0x174] ss:$8 sps:$4 sm:$0xff]  }
 0x1f9   :  { %v697_v16 = vadd.f32 %v2295_v15, %v400_v60  ;;  %v688_v17 = vpop.f32.mrb[23].mxu1  ;;  %1566 = vmatprep.subr.bf16.mxu0 %v2487_v3  ;;  %2313 = vmatprep.subr.bf16.mxu1 %v2487_v3  ;;  %v754_v20 = vmax.f32 %v694_v12, 0.0  ;;  %v2366_v60 = vld [vmem:[%s3438_s5 + $0x130] ss:$8 sps:$4 sm:$0xff]   ;;  %v2393_v13 = vld [vmem:[%s3438_s5 + $0x54] ss:$8 sps:$4 sm:$0xff]  }
 0x1fa   :  { %v689_v19 = vadd.f32 %v688_v17, %v390_v48  ;;  %v752_v23 = vmax.f32 %v686_v14, 0.0  ;;  %v440_v47 = vpop.permute.xlu1 %439  ;;  %v2392_v12 = vld [vmem:[%s3438_s5 + $0x170] ss:$8 sps:$4 sm:$0xff]   ;;  %v2395_v14 = vld [vmem:[%s3438_s5 + $0x184] ss:$8 sps:$4 sm:$0xff]  }
 0x1fb   :  { %v755_v21 = vmax.f32 %v697_v16, 0.0  ;;  %v2397_v15 = vld [vmem:[%s3438_s5 + $0x50] ss:$8 sps:$4 sm:$0xff]   ;;  %v2398_v16 = vld [vmem:[%s3438_s5 + $0x180] ss:$8 sps:$4 sm:$0xff]  }
 0x1fc   :  { %v753_v24 = vmax.f32 %v689_v19, 0.0  ;;  %1567 = vmatpush1.bf16.msra.mxu0 %v837_v8  ;;  %2329 = vmatpush1.bf16.msra.mxu1 %v837_v8  ;;  %v2386_v8 = vld [vmem:[%s3438_s5 + $0x160] ss:$8 sps:$4 sm:$0xff]   ;;  %v2399_v17 = vld [vmem:[%s3438_s5 + $0x64] ss:$8 sps:$4 sm:$0xff]  }
 0x1fd   :  { %v839_v25 = vpack.c.bf16 %v755_v21, %v754_v20  ;;  %1568 = vmatprep.subr.bf16.mxu0 %v2487_v3  ;;  %2314 = vmatprep.subr.bf16.mxu1 %v2487_v3  ;;  %v2403_v19 = vld [vmem:[%s3438_s5 + $0x60] ss:$8 sps:$4 sm:$0xff]   ;;  %v2404_v20 = vld [vmem:[%s3438_s5 + $0x190] ss:$8 sps:$4 sm:$0xff]   ;;  %v2405_v21 = vld [vmem:[%s3438_s5 + $0x74] ss:$8 sps:$4 sm:$0xff]  }
 0x1fe   :  { %v838_v26 = vpack.c.bf16 %v753_v24, %v752_v23  ;;  %v2298_v27 = vpop.f32.mrb[24].mxu1  ;;  %v3077_v23 = vpop.permute.xlu1 %995 }
 0x1ff   :  { %v710_v28 = vadd.f32 %v2298_v27, %v415_v18  ;;  %v701_v29 = vpop.f32.mrb[25].mxu1  ;;  %v2401_v18 = vld [vmem:[%s3438_s5 + $0x194] ss:$8 sps:$4 sm:$0xff]   ;;  %v3079_v24 = vpop.permute.xlu0 %990  ;;  %v2411_v27 = vld [vmem:[%s3438_s5 + $0x84] ss:$8 sps:$4 sm:$0xff]  }
 0x200   :  { %v702_v31 = vadd.f32 %v701_v29, %v405_v5  ;;  %v2299_v32 = vpop.f32.mrb[26].mxu1  ;;  %1569 = vmatpush1.bf16.msra.mxu0 %v838_v26  ;;  %2330 = vmatpush1.bf16.msra.mxu1 %v838_v26  ;;  %v2381_v5 = vld [vmem:[%s3438_s5 + $0x34] ss:$8 sps:$4 sm:$0xff]   ;;  %v2410_v26 = vld [vmem:[%s3438_s5 + $0x1a0] ss:$8 sps:$4 sm:$0xff]  }
 0x201   :  { %v713_v33 = vadd.f32 %v2299_v32, %v420_v22  ;;  %v704_v34 = vpop.f32.mrb[27].mxu1  ;;  %1570 = vmatprep.subr.bf16.mxu0 %v2487_v3  ;;  %2315 = vmatprep.subr.bf16.mxu1 %v2487_v3  ;;  %v758_v37 = vmax.f32 %v710_v28, 0.0  ;;  %v2407_v22 = vld [vmem:[%s3438_s5 + $0x1a4] ss:$8 sps:$4 sm:$0xff]   ;;  %v2413_v28 = vld [vmem:[%s3438_s5 + $0x1b4] ss:$8 sps:$4 sm:$0xff]  }
 0x202   :  { %v705_v36 = vadd.f32 %v704_v34, %v410_v9  ;;  %v756_v39 = vmax.f32 %v702_v31, 0.0  ;;  %v2387_v9 = vld [vmem:[%s3438_s5 + $0x44] ss:$8 sps:$4 sm:$0xff]   ;;  %v3093_v29 = vpop.permute.xlu1 %915  ;;  %v2416_v34 = vld [vmem:[%s3438_s5 + $0x1b0] ss:$8 sps:$4 sm:$0xff]  }
 0x203   :  { %v759_v38 = vmax.f32 %v713_v33, 0.0  ;;  %v2415_v33 = vld [vmem:[%s3438_s5 + $0x80] ss:$8 sps:$4 sm:$0xff]  }
 0x204   :  { %v757_v40 = vmax.f32 %v705_v36, 0.0  ;;  %1571 = vmatpush1.bf16.msra.mxu0 %v839_v25  ;;  %2331 = vmatpush1.bf16.msra.mxu1 %v839_v25  ;;  %v2409_v25 = vld [vmem:[%s3438_s5 + $0x70] ss:$8 sps:$4 sm:$0xff]   ;;  %v2419_v36 = vld [vmem:[%s3438_s5 + $0x1c4] ss:$8 sps:$4 sm:$0xff]  }
 0x205   :  { %v841_v41 = vpack.c.bf16 %v759_v38, %v758_v37  ;;  %1572 = vmatprep.subr.bf16.mxu0 %v2487_v3  ;;  %2316 = vmatprep.subr.bf16.mxu1 %v2487_v3 }
 0x206   :  { %v840_v43 = vpack.c.bf16 %v757_v40, %v756_v39  ;;  %v2302_v44 = vpop.f32.mrb[28].mxu1  ;;  %v3097_v31 = vpop.permute.xlu1 %1005  ;;  %v2421_v39 = vld [vmem:[%s3438_s5 + $0x90] ss:$8 sps:$4 sm:$0xff]   ;;  %v2422_v40 = vld [vmem:[%s3438_s5 + $0x1c0] ss:$8 sps:$4 sm:$0xff]  }
 0x207   :  { %v726_v45 = vadd.f32 %v2302_v44, %v435_v42  ;;  %v717_v46 = vpop.f32.mrb[29].mxu1  ;;  %v2425_v42 = vld [vmem:[%s3438_s5 + $0x1d4] ss:$8 sps:$4 sm:$0xff]  }
 0x208   :  { %v718_v48 = vadd.f32 %v717_v46, %v425_v30  ;;  %v2303_v49 = vpop.f32.mrb[30].mxu1  ;;  %1573 = vmatpush1.bf16.msra.mxu0 %v840_v43  ;;  %2332 = vmatpush1.bf16.msra.mxu1 %v840_v43  ;;  %v3095_v30 = vpop.permute.xlu0 %910  ;;  %v2428_v46 = vld [vmem:[%s3438_s5 + $0x1d0] ss:$8 sps:$4 sm:$0xff]  }
 0x209   :  { %v729_v50 = vadd.f32 %v2303_v49, %v440_v47  ;;  %v720_v51 = vpop.f32.mrb[31].mxu1  ;;  %1574 = vmatprep.subr.bf16.mxu0 %v2487_v3  ;;  %2317 = vmatprep.subr.bf16.mxu1 %v2487_v3  ;;  %v762_v53 = vmax.f32 %v726_v45, 0.0  ;;  %v2427_v45 = vld [vmem:[%s3438_s5 + $0xa0] ss:$8 sps:$4 sm:$0xff]   ;;  %v2429_v47 = vld [vmem:[%s3438_s5 + $0xb4] ss:$8 sps:$4 sm:$0xff]  }
 0x20a   :  { %v721_v52 = vadd.f32 %v720_v51, %v430_v35  ;;  %v760_v55 = vmax.f32 %v718_v48, 0.0  ;;  %v2417_v35 = vld [vmem:[%s3438_s5 + $0x94] ss:$8 sps:$4 sm:$0xff]   ;;  %v3113_v37 = vpop.permute.xlu1 %925  ;;  %v2431_v48 = vld [vmem:[%s3438_s5 + $0x1e4] ss:$8 sps:$4 sm:$0xff]  }
 0x20b   :  { %v763_v54 = vmax.f32 %v729_v50, 0.0 }
 0x20c   :  { %v761_v56 = vmax.f32 %v721_v52, 0.0  ;;  %1575 = vmatpush1.bf16.msra.mxu0 %v841_v41  ;;  %2333 = vmatpush1.bf16.msra.mxu1 %v841_v41  ;;  %v3099_v32 = vpop.permute.xlu0 %1000  ;;  %v2423_v41 = vld [vmem:[%s3438_s5 + $0xa4] ss:$8 sps:$4 sm:$0xff]  }
 0x20d   :  { %v843_v57 = vpack.c.bf16 %v763_v54, %v762_v53  ;;  %1576 = vmatprep.subr.bf16.mxu0 %v2487_v3  ;;  %2318 = vmatprep.subr.bf16.mxu1 %v2487_v3  ;;  %v2433_v53 = vld [vmem:[%s3438_s5 + $0xb0] ss:$8 sps:$4 sm:$0xff]   ;;  %v2434_v54 = vld [vmem:[%s3438_s5 + $0x1e0] ss:$8 sps:$4 sm:$0xff]  }
 0x20e   :  { %v842_v58 = vpack.c.bf16 %v761_v56, %v760_v55  ;;  %v3129_v43 = vpop.permute.xlu1 %1015  ;;  %v2435_v55 = vld [vmem:[%s3438_s5 + $0xc4] ss:$8 sps:$4 sm:$0xff]   ;;  %v2437_v56 = vld [vmem:[%s3438_s5 + $0x1f4] ss:$8 sps:$4 sm:$0xff]  }
 0x210   :  { %1577 = vmatpush1.bf16.msra.mxu0 %v842_v58  ;;  %2334 = vmatpush1.bf16.msra.mxu1 %v842_v58  ;;  %v3115_v38 = vpop.permute.xlu0 %920 }
 0x211   :  { %1578 = vmatprep.subr.bf16.mxu0 %v2487_v3  ;;  %2319 = vmatprep.subr.bf16.mxu1 %v2487_v3  ;;  %v2373_v3 = vld [vmem:[%s3438_s5 + $0x10] ss:$8 sps:$4 sm:$0xff]  }
 0x212   :  { %v3145_v49 = vpop.permute.xlu1 %935 }
 0x214   :  { %1579 = vmatpush1.bf16.msra.mxu0 %v843_v57  ;;  %2335 = vmatpush1.bf16.msra.mxu1 %v843_v57  ;;  %v3131_v44 = vpop.permute.xlu0 %1010 }
 0x216   :  { %v3149_v51 = vpop.permute.xlu1 %1025 }
 0x217   :  { %1581 = vmatmul.mubr.bf16.vlgmr.msra.gmra.mrb[8].mxu0 %v2363_v59  ;;  %1733 = vmatmul.mubr.bf16.vlgmr.msra.gmra.mrb[32].mxu1 %v2366_v60  ;;  %v2439_v59 = vld [vmem:[%s3438_s5 + $0xc0] ss:$8 sps:$4 sm:$0xff]   ;;  %v2440_v60 = vld [vmem:[%s3438_s5 + $0x1f0] ss:$8 sps:$4 sm:$0xff]  }
 0x218   :  { %1588 = vmatprep.mubr.bf16.mxu0 %v2369_v62  ;;  %1740 = vmatprep.mubr.bf16.mxu1 %v2371_v61  ;;  %v3147_v50 = vpop.permute.xlu0 %930  ;;  %v2441_v62 = vld [vmem:[%s3438_s5 + $0xd4] ss:$8 sps:$4 sm:$0xff]  }
 0x21a   :  { %v3165_v57 = vpop.permute.xlu1 %945 }
 0x21c   :  { %v3151_v52 = vpop.permute.xlu0 %1020 }
 0x21e   :  { %v3178_v61 = vpop.permute.xlu1 %1035 }
 0x21f   :  { %1589 = vmatmul.mubr.bf16.gmra.mrb[12].mxu0 %v2373_v3  ;;  %1741 = vmatmul.mubr.bf16.gmra.mrb[36].mxu1 %v2374_v63  ;;  %v2443_v63 = vld [vmem:[%s3438_s5 + $0xd0] ss:$8 sps:$4 sm:$0xff]  }
 0x220   :  { %1596 = vmatprep.mubr.bf16.mxu0 %v2375_v0  ;;  %1748 = vmatprep.mubr.bf16.mxu1 %v2377_v1  ;;  %v3167_v58 = vpop.permute.xlu0 %940  ;;  %v2444_v0 = vld [vmem:[%s3438_s5 + $0xe4] ss:$8 sps:$4 sm:$0xff]  }
 0x222   :  { %v3188_v1 = vpop.permute.xlu1 %955 }
 0x224   :  { %v3180_v3 = vpop.permute.xlu0 %1030 }
 0x227   :  { %1597 = vmatmul.mubr.bf16.gmra.mrb[16].mxu0 %v2379_v2  ;;  %1749 = vmatmul.mubr.bf16.gmra.mrb[40].mxu1 %v2380_v4  ;;  %v3192_v4 = vpop.permute.xlu1 %1045 }
 0x228   :  { %1604 = vmatprep.mubr.bf16.mxu0 %v2381_v5  ;;  %1756 = vmatprep.mubr.bf16.mxu1 %v2383_v6  ;;  %v3190_v2 = vpop.permute.xlu0 %950  ;;  %3445 = vst [vmem:[#allocation6_spill] sm:$0xff] %v3192_v4  ;;  %v2446_v6 = vld [vmem:[%s3438_s5 + $0xe0] ss:$8 sps:$4 sm:$0xff]  }
 0x22c   :  { %v3194_v5 = vpop.permute.xlu0 %1040 }
 0x22d   :  { %3446 = vst [vmem:[#allocation7_spill] sm:$0xff] %v3194_v5 }
 0x22f   :  { %1605 = vmatmul.mubr.bf16.gmra.mrb[20].mxu0 %v2385_v7  ;;  %1757 = vmatmul.mubr.bf16.gmra.mrb[44].mxu1 %v2386_v8  ;;  %v2447_v7 = vld [vmem:[%s3438_s5 + $0xf4] ss:$8 sps:$4 sm:$0xff]   ;;  %v3202_v8 = vpop.permute.xlu1 %965 }
 0x230   :  { %1612 = vmatprep.mubr.bf16.mxu0 %v2387_v9  ;;  %1764 = vmatprep.mubr.bf16.mxu1 %v2389_v10  ;;  %v3204_v9 = vpop.permute.xlu0 %960  ;;  %v2449_v10 = vld [vmem:[%s3438_s5 + $0xf0] ss:$8 sps:$4 sm:$0xff]  }
 0x237   :  { %1613 = vmatmul.mubr.bf16.gmra.mrb[24].mxu0 %v2391_v11  ;;  %1765 = vmatmul.mubr.bf16.gmra.mrb[48].mxu1 %v2392_v12  ;;  %v2450_v11 = vld [vmem:[%s3438_s5 + $0x104] ss:$8 sps:$4 sm:$0xff]   ;;  %v3212_v12 = vpop.permute.xlu1 %1055 }
 0x238   :  { %1620 = vmatprep.mubr.bf16.mxu0 %v2393_v13  ;;  %1772 = vmatprep.mubr.bf16.mxu1 %v2395_v14  ;;  %3447 = vst [vmem:[#allocation8_spill] sm:$0xff] %v3212_v12  ;;  %v3214_v13 = vpop.permute.xlu0 %1050  ;;  %v2452_v14 = vld [vmem:[%s3438_s5 + $0x100] ss:$8 sps:$4 sm:$0xff]  }
 0x239   :  { %3448 = vst [vmem:[#allocation9_spill] sm:$0xff] %v3214_v13 }
 0x23f   :  { %1621 = vmatmul.mubr.bf16.gmra.mrb[28].mxu0 %v2397_v15  ;;  %1773 = vmatmul.mubr.bf16.gmra.mrb[52].mxu1 %v2398_v16  ;;  %v2453_v15 = vld [vmem:[%s3438_s5 + $0x114] ss:$8 sps:$4 sm:$0xff]   ;;  %v3222_v16 = vpop.permute.xlu1 %975 }
 0x240   :  { %1628 = vmatprep.mubr.bf16.mxu0 %v2399_v17  ;;  %1780 = vmatprep.mubr.bf16.mxu1 %v2401_v18  ;;  %v3224_v17 = vpop.permute.xlu0 %970 }
 0x243   :  { %v3226_v18 = vpop.permute.xlu1 %1065 }
 0x244   :  { %3449 = vst [vmem:[#allocation10_spill] sm:$0xff] %v3226_v18 }
 0x247   :  { %1629 = vmatmul.mubr.bf16.gmra.mrb[32].mxu0 %v2403_v19  ;;  %1781 = vmatmul.mubr.bf16.gmra.mrb[56].mxu1 %v2404_v20  ;;  %v3228_v19 = vpop.permute.xlu0 %1060  ;;  %v2455_v20 = vld [vmem:[%s3438_s5 + $0x110] ss:$8 sps:$4 sm:$0xff]  }
 0x248   :  { %1636 = vmatprep.mubr.bf16.mxu0 %v2405_v21  ;;  %1788 = vmatprep.mubr.bf16.mxu1 %v2407_v22  ;;  %3450 = vst [vmem:[#allocation11_spill] sm:$0xff] %v3228_v19  ;;  %v2456_v21 = vld [vmem:[%s3438_s5 + $0x124] ss:$8 sps:$4 sm:$0xff]   ;;  %v3236_v22 = vpop.permute.xlu1 %985 }
 0x24f   :  { %1637 = vmatmul.mubr.bf16.gmra.mrb[36].mxu0 %v2409_v25  ;;  %1789 = vmatmul.mubr.bf16.gmra.mrb[60].mxu1 %v2410_v26  ;;  %v3238_v25 = vpop.permute.xlu0 %980  ;;  %v2458_v26 = vld [vmem:[%s3438_s5 + $0x120] ss:$8 sps:$4 sm:$0xff]  }
 0x250   :  { %1644 = vmatprep.mubr.bf16.mxu0 %v2411_v27  ;;  %1796 = vmatprep.mubr.bf16.mxu1 %v2413_v28  ;;  %v3243_v27 = vpop.permute.xlu1 %1155 }
 0x253   :  { %v3245_v28 = vpop.permute.xlu0 %1150 }
 0x257   :  { %1645 = vmatmul.mubr.bf16.gmra.mrb[40].mxu0 %v2415_v33  ;;  %1797 = vmatmul.mubr.bf16.gmra.mrb[64].mxu1 %v2416_v34  ;;  %v3247_v33 = vpop.permute.xlu1 %1075  ;;  %v3249_v34 = vpop.permute.xlu0 %1070 }
 0x258   :  { %1652 = vmatprep.mubr.bf16.mxu0 %v2417_v35  ;;  %1804 = vmatprep.mubr.bf16.mxu1 %v2419_v36  ;;  %3451 = vst [vmem:[#allocation12_spill] sm:$0xff] %v3247_v33  ;;  %3452 = vst [vmem:[#allocation13_spill] sm:$0xff] %v3249_v34 }
 0x25b   :  { %v3251_v35 = vpop.permute.xlu1 %1165  ;;  %v3253_v36 = vpop.permute.xlu0 %1160 }
 0x25f   :  { %1653 = vmatmul.mubr.bf16.gmra.mrb[44].mxu0 %v2421_v39  ;;  %1805 = vmatmul.mubr.bf16.gmra.mrb[68].mxu1 %v2422_v40  ;;  %v3255_v39 = vpop.permute.xlu1 %1085  ;;  %v3257_v40 = vpop.permute.xlu0 %1080 }
 0x260   :  { %1660 = vmatprep.mubr.bf16.mxu0 %v2423_v41  ;;  %1812 = vmatprep.mubr.bf16.mxu1 %v2425_v42  ;;  %3453 = vst [vmem:[#allocation14_spill] sm:$0xff] %v3255_v39  ;;  %3454 = vst [vmem:[#allocation15_spill] sm:$0xff] %v3257_v40 }
 0x263   :  { %v3259_v41 = vpop.permute.xlu1 %1175  ;;  %v3261_v42 = vpop.permute.xlu0 %1170 }
 0x267   :  { %1661 = vmatmul.mubr.bf16.gmra.mrb[48].mxu0 %v2427_v45  ;;  %1813 = vmatmul.mubr.bf16.gmra.mrb[72].mxu1 %v2428_v46  ;;  %v3263_v45 = vpop.permute.xlu1 %1095  ;;  %v3265_v46 = vpop.permute.xlu0 %1090 }
 0x268   :  { %1668 = vmatprep.mubr.bf16.mxu0 %v2429_v47  ;;  %1820 = vmatprep.mubr.bf16.mxu1 %v2431_v48  ;;  %3455 = vst [vmem:[#allocation16_spill] sm:$0xff] %v3263_v45  ;;  %3456 = vst [vmem:[#allocation17_spill] sm:$0xff] %v3265_v46 }
 0x26b   :  { %v3267_v47 = vpop.permute.xlu1 %1185  ;;  %v3269_v48 = vpop.permute.xlu0 %1180 }
 0x26f   :  { %1669 = vmatmul.mubr.bf16.gmra.mrb[52].mxu0 %v2433_v53  ;;  %1821 = vmatmul.mubr.bf16.gmra.mrb[76].mxu1 %v2434_v54  ;;  %v1106_v53 = vpop.permute.xlu1 %1105  ;;  %v1101_v54 = vpop.permute.xlu0 %1100 }
 0x270   :  { %1676 = vmatprep.mubr.bf16.mxu0 %v2435_v55  ;;  %1828 = vmatprep.mubr.bf16.mxu1 %v2437_v56 }
 0x273   :  { %v3271_v55 = vpop.permute.xlu1 %1195  ;;  %v3273_v56 = vpop.permute.xlu0 %1190 }
 0x277   :  { %1677 = vmatmul.mubr.bf16.gmra.mrb[56].mxu0 %v2439_v59  ;;  %1829 = vmatmul.mubr.bf16.gmra.mrb[80].mxu1 %v2440_v60  ;;  %v1116_v59 = vpop.permute.xlu1 %1115  ;;  %v1111_v60 = vpop.permute.xlu0 %1110 }
 0x278   :  { %1684 = vmatprep.mubr.bf16.mxu0 %v2441_v62 }
 0x27b   :  { %v3275_v62 = vpop.permute.xlu1 %1205 }
 0x27f   :  { %1685 = vmatmul.mubr.bf16.gmra.mrb[60].mxu0 %v2443_v63  ;;  %v3277_v63 = vpop.permute.xlu0 %1200 }
 0x280   :  { %1692 = vmatprep.mubr.bf16.mxu0 %v2444_v0  ;;  %v1940_v0 = vlaneseq }
 0x287   :  { %1693 = vmatmul.mubr.bf16.gmra.mrb[64].mxu0 %v2446_v6  ;;  %v2488_v6 = vmov 1966171168  }
 0x288   :  { %1700 = vmatprep.mubr.bf16.mxu0 %v2447_v7  ;;  %v1954_v7 = vunpack.c.l.s4 %v2488_v6 }
 0x28f   :  { %1701 = vmatmul.mubr.bf16.gmra.mrb[68].mxu0 %v2449_v10  ;;  %v3279_v10 = vshrl.u32 %v1940_v0, 7 }
 0x290   :  { %1708 = vmatprep.mubr.bf16.mxu0 %v2450_v11  ;;  %v1955_v11 = vunpack.c.0.s8 %v1954_v7 }
 0x291   :  { %3457 = vst [vmem:[#allocation18_spill] sm:$0xff] %v3279_v10 }
 0x292   :  { %v1958_v46 = vsub.s32 %v1955_v11, %v3279_v10 }
 0x297   :  { %1709 = vmatmul.mubr.bf16.gmra.mrb[72].mxu0 %v2452_v14  ;;  %v1126_v14 = vpop.permute.xlu1 %1125 }
 0x298   :  { %1716 = vmatprep.mubr.bf16.mxu0 %v2453_v15  ;;  %v1121_v15 = vpop.permute.xlu0 %1120 }
 0x29f   :  { %1717 = vmatmul.mubr.bf16.gmra.mrb[76].mxu0 %v2455_v20  ;;  %v2180_v20 = vld.sshfl [vmem:[%s3440_s7] sm:$0x33 pattern:$0x75316420]  ;;  %s2489_s7 = smov [#allocation3]  }
 0x2a0   :  { %1724 = vmatprep.mubr.bf16.mxu0 %v2456_v21  ;;  %v1952_v45 = vcombine.high %v2180_v20, %v2180_v20  ;;  %v3289_v4 = vrot.slane %v2180_v20, %v1958_v46  ;;  %s2066_s20 = sshll.u32 %s2489_s7, 4  ;;  %s2067_s20 = int_to_ptr.vmem [resolvable:$true] %s2066_s20 }
 0x2a1   :  { %s2463_s21 = scalar_lea.vmem %s2067_s20, 16  ;;  %s2467_s22 = scalar_lea.vmem %s2067_s20, 32 }
 0x2a2   :  { %v3286_v18 = vrot.slane %v1952_v45, %v1958_v46  ;;  %3458 = vst [vmem:[#allocation19_spill] sm:$0xff] %v3289_v4  ;;  %p2464_p0 = scmp.ne.s32.totalorder %s2067_s20, %s2463_s21  ;;  %p2468_p1 = scmp.lt.s32.totalorder %s2067_s20, %s2067_s20 }
 0x2a3   :  { %p2469_p2 = scmp.lt.s32.totalorder %s2467_s22, %s2463_s21 }
 0x2a4   :  { %2005 = vmatprep.mubr.bf16.mxu1 %v3286_v18 }
 0x2a5   :  { %p2470_p3 = por %p2469_p2, %p2468_p1 }
 0x2a7   :  { %1725 = vmatmul.mubr.bf16.gmra.mrb[80].mxu0 %v2458_v26  ;;  %p2471_p4 = pnand %p2470_p3, %p2464_p0 }
 0x2ea   :  { %v1582_v21 = vpop.f32.mrb[8].mxu0  ;;  %v1734_v26 = vpop.f32.mrb[32].mxu1 }
 0x2eb   :  { %v1583_v39 = vadd.f32 %v1582_v21, %v3095_v30  ;;  %v1735_v40 = vadd.f32 %v1734_v26, %v1101_v54  ;;  %v1584_v33 = vpop.f32.mrb[9].mxu0  ;;  %v1736_v34 = vpop.f32.mrb[33].mxu1 }
 0x2ec   :  { %v1585_v6 = vpop.f32.mrb[10].mxu0  ;;  %v1737_v0 = vpop.f32.mrb[34].mxu1 }
 0x2ed   :  { %v1586_v7 = vadd.f32 %v1585_v6, %v3093_v29  ;;  %v1738_v19 = vadd.f32 %v1737_v0, %v1106_v53  ;;  %v1587_v12 = vpop.f32.mrb[11].mxu0  ;;  %v1739_v13 = vpop.f32.mrb[35].mxu1  ;;  %v1837_v5 = vmax.f32 %v1583_v39, 0.0  ;;  %v1875_v11 = vmax.f32 %v1735_v40, 0.0 }
 0x2ee   :  { %v3292_v54 = vpop.permute.xlu1 %1215  ;;  %v3294_v33 = vpop.permute.xlu0 %1210 }
 0x2ef   :  { %v1838_v10 = vmax.f32 %v1586_v7, 0.0  ;;  %v1876_v30 = vmax.f32 %v1738_v19, 0.0 }
 0x2f1   :  { %v3296_v34 = vpack.c.bf16 %v1838_v10, %v1837_v5  ;;  %v3298_v45 = vpack.c.bf16 %v1876_v30, %v1875_v11 }
 0x2f2   :  { %v1590_v29 = vpop.f32.mrb[12].mxu0  ;;  %v1742_v53 = vpop.f32.mrb[36].mxu1 }
 0x2f3   :  { %3459 = vst [vmem:[#allocation20_spill] sm:$0xff] %v3298_v45  ;;  %v1591_v12 = vadd.f32 %v1590_v29, %v3115_v38  ;;  %v1743_v13 = vadd.f32 %v1742_v53, %v1111_v60  ;;  %v1592_v46 = vpop.f32.mrb[13].mxu0  ;;  %v1744_v20 = vpop.f32.mrb[37].mxu1 }
 0x2f4   :  { %v1593_v21 = vpop.f32.mrb[14].mxu0  ;;  %v1745_v39 = vpop.f32.mrb[38].mxu1 }
 0x2f5   :  { %v1594_v40 = vadd.f32 %v1593_v21, %v3113_v37  ;;  %v1746_v19 = vadd.f32 %v1745_v39, %v1116_v59  ;;  %v1595_v26 = vpop.f32.mrb[15].mxu0  ;;  %v1747_v6 = vpop.f32.mrb[39].mxu1  ;;  %v1839_v0 = vmax.f32 %v1591_v12, 0.0  ;;  %v1877_v7 = vmax.f32 %v1743_v13, 0.0 }
 0x2f6   :  { %v1136_v11 = vpop.permute.xlu1 %1135  ;;  %v1131_v30 = vpop.permute.xlu0 %1130 }
 0x2f7   :  { %v1840_v5 = vmax.f32 %v1594_v40, 0.0  ;;  %v1878_v10 = vmax.f32 %v1746_v19, 0.0 }
 0x2f9   :  { %v3302_v45 = vpack.c.bf16 %v1840_v5, %v1839_v0  ;;  %v3304_v4 = vpack.c.bf16 %v1878_v10, %v1877_v7 }
 0x2fa   :  { %v1598_v38 = vpop.f32.mrb[16].mxu0  ;;  %v1750_v60 = vpop.f32.mrb[40].mxu1 }
 0x2fb   :  { %v1599_v29 = vadd.f32 %v1598_v38, %v3147_v50  ;;  %v1751_v53 = vadd.f32 %v1750_v60, %v1121_v15  ;;  %v1600_v46 = vpop.f32.mrb[17].mxu0  ;;  %v1752_v37 = vpop.f32.mrb[41].mxu1 }
 0x2fc   :  { %v1601_v59 = vpop.f32.mrb[18].mxu0  ;;  %v1753_v20 = vpop.f32.mrb[42].mxu1 }
 0x2fd   :  { %v1602_v12 = vadd.f32 %v1601_v59, %v3145_v49  ;;  %v1754_v13 = vadd.f32 %v1753_v20, %v1126_v14  ;;  %v1603_v21 = vpop.f32.mrb[19].mxu0  ;;  %v1755_v39 = vpop.f32.mrb[43].mxu1  ;;  %v1841_v40 = vmax.f32 %v1599_v29, 0.0  ;;  %v1879_v19 = vmax.f32 %v1751_v53, 0.0 }
 0x2fe   :  { %v3308_v0 = vpop.permute.xlu1 %1225  ;;  %v3310_v7 = vpop.permute.xlu0 %1220 }
 0x2ff   :  { %v1842_v26 = vmax.f32 %v1602_v12, 0.0  ;;  %v1880_v6 = vmax.f32 %v1754_v13, 0.0 }
 0x301   :  { %v3312_v5 = vpack.c.bf16 %v1842_v26, %v1841_v40  ;;  %v3314_v50 = vpack.c.bf16 %v1880_v6, %v1879_v19 }
 0x302   :  { %v1606_v15 = vpop.f32.mrb[20].mxu0  ;;  %v1758_v10 = vpop.f32.mrb[44].mxu1 }
 0x303   :  { %v1607_v38 = vadd.f32 %v1606_v15, %v3167_v58  ;;  %v1759_v49 = vadd.f32 %v1758_v10, %v1131_v30  ;;  %v1608_v14 = vpop.f32.mrb[21].mxu0  ;;  %v1760_v60 = vpop.f32.mrb[45].mxu1 }
 0x304   :  { %v1609_v46 = vpop.f32.mrb[22].mxu0  ;;  %v1761_v29 = vpop.f32.mrb[46].mxu1 }
 0x305   :  { %v1610_v53 = vadd.f32 %v1609_v46, %v3165_v57  ;;  %v1762_v37 = vadd.f32 %v1761_v29, %v1136_v11  ;;  %v1611_v59 = vpop.f32.mrb[23].mxu0  ;;  %v1763_v20 = vpop.f32.mrb[47].mxu1  ;;  %v1843_v12 = vmax.f32 %v1607_v38, 0.0  ;;  %v1881_v13 = vmax.f32 %v1759_v49, 0.0 }
 0x306   :  { %v1146_v40 = vpop.permute.xlu1 %1145  ;;  %v1141_v19 = vpop.permute.xlu0 %1140 }
 0x307   :  { %v1844_v21 = vmax.f32 %v1610_v53, 0.0  ;;  %v1882_v39 = vmax.f32 %v1762_v37, 0.0 }
 0x309   :  { %v3318_v26 = vpack.c.bf16 %v1844_v21, %v1843_v12  ;;  %v3320_v6 = vpack.c.bf16 %v1882_v39, %v1881_v13 }
 0x30a   :  { %v1614_v58 = vpop.f32.mrb[24].mxu0  ;;  %v1766_v30 = vpop.f32.mrb[48].mxu1 }
 0x30b   :  { %v1615_v15 = vadd.f32 %v1614_v58, %v3190_v2  ;;  %v1767_v10 = vadd.f32 %v1766_v30, %v1141_v19  ;;  %v1616_v14 = vpop.f32.mrb[25].mxu0  ;;  %v1768_v57 = vpop.f32.mrb[49].mxu1 }
 0x30c   :  { %v1617_v11 = vpop.f32.mrb[26].mxu0  ;;  %v1769_v60 = vpop.f32.mrb[50].mxu1 }
 0x30d   :  { %v1618_v38 = vadd.f32 %v1617_v11, %v3188_v1  ;;  %v1770_v49 = vadd.f32 %v1769_v60, %v1146_v40  ;;  %v1619_v46 = vpop.f32.mrb[27].mxu0  ;;  %v1771_v29 = vpop.f32.mrb[51].mxu1  ;;  %v1845_v53 = vmax.f32 %v1615_v15, 0.0  ;;  %v1883_v37 = vmax.f32 %v1767_v10, 0.0 }
 0x30f   :  { %v1846_v59 = vmax.f32 %v1618_v38, 0.0  ;;  %v1884_v20 = vmax.f32 %v1770_v49, 0.0 }
 0x311   :  { %v3324_v12 = vpack.c.bf16 %v1846_v59, %v1845_v53  ;;  %v3326_v13 = vpack.c.bf16 %v1884_v20, %v1883_v37 }
 0x312   :  { %v1622_v21 = vpop.f32.mrb[28].mxu0  ;;  %v1774_v2 = vpop.f32.mrb[52].mxu1 }
 0x313   :  { %v1623_v39 = vadd.f32 %v1622_v21, %v3204_v9  ;;  %v1775_v19 = vadd.f32 %v1774_v2, %v3245_v28  ;;  %v1624_v58 = vpop.f32.mrb[29].mxu0  ;;  %v1776_v30 = vpop.f32.mrb[53].mxu1 }
 0x314   :  { %v1625_v1 = vpop.f32.mrb[30].mxu0  ;;  %v1777_v40 = vpop.f32.mrb[54].mxu1 }
 0x315   :  { %v1626_v14 = vadd.f32 %v1625_v1, %v3202_v8  ;;  %v1778_v15 = vadd.f32 %v1777_v40, %v3243_v27  ;;  %v1627_v10 = vpop.f32.mrb[31].mxu0  ;;  %v1779_v57 = vpop.f32.mrb[55].mxu1  ;;  %v1847_v11 = vmax.f32 %v1623_v39, 0.0  ;;  %v1885_v60 = vmax.f32 %v1775_v19, 0.0 }
 0x317   :  { %v1848_v38 = vmax.f32 %v1626_v14, 0.0  ;;  %v1886_v49 = vmax.f32 %v1778_v15, 0.0 }
 0x319   :  { %v3332_v46 = vpack.c.bf16 %v1848_v38, %v1847_v11  ;;  %v3334_v29 = vpack.c.bf16 %v1886_v49, %v1885_v60 }
 0x31a   :  { %v1630_v9 = vpop.f32.mrb[32].mxu0  ;;  %v1782_v28 = vpop.f32.mrb[56].mxu1 }
 0x31b   :  { %v1631_v53 = vadd.f32 %v1630_v9, %v3224_v17  ;;  %v1783_v37 = vadd.f32 %v1782_v28, %v3253_v36  ;;  %v1632_v59 = vpop.f32.mrb[33].mxu0  ;;  %v1784_v8 = vpop.f32.mrb[57].mxu1 }
 0x31c   :  { %v1633_v20 = vpop.f32.mrb[34].mxu0  ;;  %v1785_v27 = vpop.f32.mrb[58].mxu1 }
 0x31d   :  { %v1634_v21 = vadd.f32 %v1633_v20, %v3222_v16  ;;  %v1786_v2 = vadd.f32 %v1785_v27, %v3251_v35  ;;  %v1635_v39 = vpop.f32.mrb[35].mxu0  ;;  %v1787_v19 = vpop.f32.mrb[59].mxu1  ;;  %v1849_v58 = vmax.f32 %v1631_v53, 0.0  ;;  %v1887_v30 = vmax.f32 %v1783_v37, 0.0 }
 0x31f   :  { %v1850_v1 = vmax.f32 %v1634_v21, 0.0  ;;  %v1888_v40 = vmax.f32 %v1786_v2, 0.0 }
 0x321   :  { %v3340_v14 = vpack.c.bf16 %v1850_v1, %v1849_v58  ;;  %v3342_v15 = vpack.c.bf16 %v1888_v40, %v1887_v30 }
 0x322   :  { %v1638_v17 = vpop.f32.mrb[36].mxu0  ;;  %v1790_v36 = vpop.f32.mrb[60].mxu1 }
 0x323   :  { %v1639_v10 = vadd.f32 %v1638_v17, %v3238_v25  ;;  %v1791_v57 = vadd.f32 %v1790_v36, %v3261_v42  ;;  %v1640_v11 = vpop.f32.mrb[37].mxu0  ;;  %v1792_v16 = vpop.f32.mrb[61].mxu1 }
 0x324   :  { %v1641_v60 = vpop.f32.mrb[38].mxu0  ;;  %v1793_v35 = vpop.f32.mrb[62].mxu1 }
 0x325   :  { %v1642_v38 = vadd.f32 %v1641_v60, %v3236_v22  ;;  %v1794_v49 = vadd.f32 %v1793_v35, %v3259_v41  ;;  %v1643_v9 = vpop.f32.mrb[39].mxu0  ;;  %v1795_v28 = vpop.f32.mrb[63].mxu1  ;;  %v1851_v53 = vmax.f32 %v1639_v10, 0.0  ;;  %v1889_v37 = vmax.f32 %v1791_v57, 0.0 }
 0x327   :  { %v1852_v59 = vmax.f32 %v1642_v38, 0.0  ;;  %v1890_v8 = vmax.f32 %v1794_v49, 0.0 }
 0x329   :  { %v3348_v20 = vpack.c.bf16 %v1852_v59, %v1851_v53  ;;  %v3350_v27 = vpack.c.bf16 %v1890_v8, %v1889_v37 }
 0x32a   :  { %v1646_v25 = vpop.f32.mrb[40].mxu0  ;;  %v1798_v42 = vpop.f32.mrb[64].mxu1 }
 0x32b   :  { %v1647_v21 = vadd.f32 %v1646_v25, %v3079_v24  ;;  %v1799_v2 = vadd.f32 %v1798_v42, %v3269_v48  ;;  %v1648_v39 = vpop.f32.mrb[41].mxu0  ;;  %v1800_v22 = vpop.f32.mrb[65].mxu1 }
 0x32c   :  { %v1649_v19 = vpop.f32.mrb[42].mxu0  ;;  %v1801_v41 = vpop.f32.mrb[66].mxu1 }
 0x32d   :  { %v1650_v58 = vadd.f32 %v1649_v19, %v3077_v23  ;;  %v1802_v30 = vadd.f32 %v1801_v41, %v3267_v47  ;;  %v1651_v1 = vpop.f32.mrb[43].mxu0  ;;  %v1803_v40 = vpop.f32.mrb[67].mxu1  ;;  %v1853_v17 = vmax.f32 %v1647_v21, 0.0  ;;  %v1891_v36 = vmax.f32 %v1799_v2, 0.0 }
 0x32f   :  { %v1854_v10 = vmax.f32 %v1650_v58, 0.0  ;;  %v1892_v57 = vmax.f32 %v1802_v30, 0.0 }
 0x331   :  { %v1910_v11 = vpack.c.bf16 %v1854_v10, %v1853_v17  ;;  %v3356_v16 = vpack.c.bf16 %v1892_v57, %v1891_v36 }
 0x332   :  { %v1654_v24 = vpop.f32.mrb[44].mxu0  ;;  %v1806_v60 = vpop.f32.mrb[68].mxu1 }
 0x333   :  { %v1655_v48 = vadd.f32 %v1654_v24, %v3099_v32  ;;  %v1807_v35 = vadd.f32 %v1806_v60, %v3273_v56  ;;  %v1656_v38 = vpop.f32.mrb[45].mxu0  ;;  %v1808_v49 = vpop.f32.mrb[69].mxu1  ;;  %2208 = vmatprep.subr.bf16.mxu1 %v1910_v11 }
 0x334   :  { %v1657_v23 = vpop.f32.mrb[46].mxu0  ;;  %v1809_v47 = vpop.f32.mrb[70].mxu1  ;;  %2209 = vmatpush3.bf16.msra.mxu1 %v3296_v34 }
 0x335   :  { %v1658_v9 = vadd.f32 %v1657_v23, %v3097_v31  ;;  %v1810_v28 = vadd.f32 %v1809_v47, %v3271_v55  ;;  %v1659_v53 = vpop.f32.mrb[47].mxu0  ;;  %v1811_v37 = vpop.f32.mrb[71].mxu1  ;;  %v1855_v59 = vmax.f32 %v1655_v48, 0.0  ;;  %v1893_v8 = vmax.f32 %v1807_v35, 0.0 }
 0x337   :  { %v1856_v25 = vmax.f32 %v1658_v9, 0.0  ;;  %v1894_v42 = vmax.f32 %v1810_v28, 0.0 }
 0x339   :  { %v1911_v32 = vpack.c.bf16 %v1856_v25, %v1855_v59  ;;  %v3363_v21 = vpack.c.bf16 %v1894_v42, %v1893_v8 }
 0x33a   :  { %v1662_v56 = vpop.f32.mrb[48].mxu0  ;;  %v1814_v2 = vpop.f32.mrb[72].mxu1 }
 0x33b   :  { %v1663_v39 = vadd.f32 %v1662_v56, %v3131_v44  ;;  %v1815_v22 = vadd.f32 %v1814_v2, %v3277_v63  ;;  %v1664_v34 = vpop.f32.mrb[49].mxu0  ;;  %v1816_v19 = vpop.f32.mrb[73].mxu1  ;;  %2210 = vmatprep.subr.bf16.mxu1 %v1911_v32 }
 0x33c   :  { %v1665_v31 = vpop.f32.mrb[50].mxu0  ;;  %v1817_v55 = vpop.f32.mrb[74].mxu1  ;;  %2211 = vmatpush3.bf16.msra.mxu1 %v3302_v45 }
 0x33d   :  { %v1666_v41 = vadd.f32 %v1665_v31, %v3129_v43  ;;  %v1818_v58 = vadd.f32 %v1817_v55, %v3275_v62  ;;  %v1667_v30 = vpop.f32.mrb[51].mxu0  ;;  %v1819_v1 = vpop.f32.mrb[75].mxu1  ;;  %v1857_v40 = vmax.f32 %v1663_v39, 0.0  ;;  %v1895_v17 = vmax.f32 %v1815_v22, 0.0 }
 0x33f   :  { %v1858_v36 = vmax.f32 %v1666_v41, 0.0  ;;  %v1896_v10 = vmax.f32 %v1818_v58, 0.0  ;;  %v3460_v41 = vld [vmem:[#allocation7_spill] sm:$0xff] }
 0x341   :  { %v1912_v44 = vpack.c.bf16 %v1858_v36, %v1857_v40  ;;  %v3370_v57 = vpack.c.bf16 %v1896_v10, %v1895_v17 }
 0x342   :  { %v1670_v63 = vpop.f32.mrb[52].mxu0  ;;  %v1822_v11 = vpop.f32.mrb[76].mxu1 }
 0x343   :  { %v1671_v24 = vadd.f32 %v1670_v63, %v3151_v52  ;;  %v1823_v60 = vadd.f32 %v1822_v11, %v3294_v33  ;;  %v1672_v45 = vpop.f32.mrb[53].mxu0  ;;  %v1824_v48 = vpop.f32.mrb[77].mxu1  ;;  %2212 = vmatprep.subr.bf16.mxu1 %v1912_v44  ;;  %v3462_v44 = vld [vmem:[#allocation9_spill] sm:$0xff] }
 0x344   :  { %v1673_v43 = vpop.f32.mrb[54].mxu0  ;;  %v1825_v62 = vpop.f32.mrb[78].mxu1  ;;  %2213 = vmatpush3.bf16.msra.mxu1 %v3312_v5 }
 0x345   :  { %v1674_v35 = vadd.f32 %v1673_v43, %v3149_v51  ;;  %v1826_v38 = vadd.f32 %v1825_v62, %v3292_v54  ;;  %v1675_v49 = vpop.f32.mrb[55].mxu0  ;;  %v1827_v23 = vpop.f32.mrb[79].mxu1  ;;  %v1859_v47 = vmax.f32 %v1671_v24, 0.0  ;;  %v1897_v9 = vmax.f32 %v1823_v60, 0.0  ;;  %v3463_v60 = vld [vmem:[#allocation8_spill] sm:$0xff] }
 0x347   :  { %v1860_v28 = vmax.f32 %v1674_v35, 0.0  ;;  %v1898_v53 = vmax.f32 %v1826_v38, 0.0  ;;  %v3464_v38 = vld [vmem:[#allocation11_spill] sm:$0xff] }
 0x349   :  { %v1913_v52 = vpack.c.bf16 %v1860_v28, %v1859_v47  ;;  %v3377_v37 = vpack.c.bf16 %v1898_v53, %v1897_v9  ;;  %v3465_v9 = vld [vmem:[#allocation10_spill] sm:$0xff] }
 0x34a   :  { %v1678_v33 = vpop.f32.mrb[56].mxu0  ;;  %v1830_v59 = vpop.f32.mrb[80].mxu1 }
 0x34b   :  { %v1679_v8 = vadd.f32 %v1678_v33, %v3180_v3  ;;  %v1831_v25 = vadd.f32 %v1830_v59, %v3310_v7  ;;  %v1680_v5 = vpop.f32.mrb[57].mxu0  ;;  %v1832_v42 = vpop.f32.mrb[81].mxu1  ;;  %2214 = vmatprep.subr.bf16.mxu1 %v1913_v52 }
 0x34c   :  { %v1681_v51 = vpop.f32.mrb[58].mxu0  ;;  %v1833_v54 = vpop.f32.mrb[82].mxu1  ;;  %2215 = vmatpush3.bf16.msra.mxu1 %v3318_v26 }
 0x34d   :  { %v1682_v32 = vadd.f32 %v1681_v51, %v3178_v61  ;;  %v1834_v56 = vadd.f32 %v1833_v54, %v3308_v0  ;;  %v1683_v2 = vpop.f32.mrb[59].mxu0  ;;  %v1835_v39 = vpop.f32.mrb[83].mxu1  ;;  %v1861_v22 = vmax.f32 %v1679_v8, 0.0  ;;  %v1899_v34 = vmax.f32 %v1831_v25, 0.0  ;;  %v3461_v61 = vld [vmem:[#allocation6_spill] sm:$0xff]  ;;  %v3466_v8 = vld [vmem:[#allocation13_spill] sm:$0xff] }
 0x34e   :  { %v1968_v51 = vcombine.high %v3286_v18, %v3286_v18  ;;  %v3467_v54 = vld [vmem:[#allocation12_spill] sm:$0xff]  ;;  %v3468_v39 = vld [vmem:[#allocation19_spill] sm:$0xff]  ;;  %v3470_v18 = vld [vmem:[#allocation14_spill] sm:$0xff] }
 0x34f   :  { %v1862_v19 = vmax.f32 %v1682_v32, 0.0  ;;  %v1900_v31 = vmax.f32 %v1834_v56, 0.0 }
 0x351   :  { %v1914_v3 = vpack.c.bf16 %v1862_v19, %v1861_v22  ;;  %v3384_v55 = vpack.c.bf16 %v1900_v31, %v1899_v34  ;;  %v3469_v19 = vld [vmem:[#allocation15_spill] sm:$0xff] }
 0x352   :  { %v1686_v7 = vpop.f32.mrb[60].mxu0 }
 0x353   :  { %v1687_v58 = vadd.f32 %v1686_v7, %v3460_v41  ;;  %v1688_v30 = vpop.f32.mrb[61].mxu0  ;;  %2216 = vmatprep.subr.bf16.mxu1 %v1914_v3 }
 0x354   :  { %v1689_v1 = vpop.f32.mrb[62].mxu0  ;;  %2217 = vmatpush3.bf16.msra.mxu1 %v3324_v12 }
 0x355   :  { %v1690_v26 = vadd.f32 %v1689_v1, %v3461_v61  ;;  %v1691_v0 = vpop.f32.mrb[63].mxu0  ;;  %v1863_v40 = vmax.f32 %v1687_v58, 0.0  ;;  %v3471_v61 = vld [vmem:[#allocation17_spill] sm:$0xff] }
 0x357   :  { %v1864_v17 = vmax.f32 %v1690_v26, 0.0 }
 0x359   :  { %v1915_v36 = vpack.c.bf16 %v1864_v17, %v1863_v40  ;;  %v3472_v17 = vld [vmem:[#allocation16_spill] sm:$0xff] }
 0x35a   :  { %v1694_v10 = vpop.f32.mrb[64].mxu0 }
 0x35b   :  { %v1695_v63 = vadd.f32 %v1694_v10, %v3462_v44  ;;  %v1696_v11 = vpop.f32.mrb[65].mxu0  ;;  %2218 = vmatprep.subr.bf16.mxu1 %v1915_v36 }
 0x35c   :  { %v1697_v24 = vpop.f32.mrb[66].mxu0  ;;  %2219 = vmatpush3.bf16.msra.mxu1 %v3332_v46  ;;  %v3473_v11 = vld [vmem:[#allocation20_spill] sm:$0xff] }
 0x35d   :  { %v1698_v45 = vadd.f32 %v1697_v24, %v3463_v60  ;;  %v1699_v48 = vpop.f32.mrb[67].mxu0  ;;  %v1865_v43 = vmax.f32 %v1695_v63, 0.0 }
 0x35f   :  { %v1866_v62 = vmax.f32 %v1698_v45, 0.0 }
 0x361   :  { %v1916_v12 = vpack.c.bf16 %v1866_v62, %v1865_v43 }
 0x362   :  { %v1702_v35 = vpop.f32.mrb[68].mxu0 }
 0x363   :  { %v1703_v49 = vadd.f32 %v1702_v35, %v3464_v38  ;;  %v1704_v23 = vpop.f32.mrb[69].mxu0  ;;  %2220 = vmatprep.subr.bf16.mxu1 %v1916_v12 }
 0x364   :  { %v1705_v47 = vpop.f32.mrb[70].mxu0  ;;  %2221 = vmatpush3.bf16.msra.mxu1 %v3340_v14 }
 0x365   :  { %v1706_v28 = vadd.f32 %v1705_v47, %v3465_v9  ;;  %v1707_v53 = vpop.f32.mrb[71].mxu0  ;;  %v1867_v52 = vmax.f32 %v1703_v49, 0.0 }
 0x367   :  { %v1868_v33 = vmax.f32 %v1706_v28, 0.0 }
 0x369   :  { %v1917_v46 = vpack.c.bf16 %v1868_v33, %v1867_v52 }
 0x36a   :  { %v1710_v59 = vpop.f32.mrb[72].mxu0 }
 0x36b   :  { %v1711_v25 = vadd.f32 %v1710_v59, %v3466_v8  ;;  %v1712_v5 = vpop.f32.mrb[73].mxu0  ;;  %2222 = vmatprep.subr.bf16.mxu1 %v1917_v46 }
 0x36c   :  { %v1713_v42 = vpop.f32.mrb[74].mxu0  ;;  %2223 = vmatpush3.bf16.msra.mxu1 %v3348_v20 }
 0x36d   :  { %v1714_v32 = vadd.f32 %v1713_v42, %v3467_v54  ;;  %2230 = vmatprep.subr.bf16.mxu1 %v3334_v29  ;;  %v1715_v14 = vpop.f32.mrb[75].mxu0  ;;  %v1869_v56 = vmax.f32 %v1711_v25, 0.0 }
 0x36f   :  { %v1870_v2 = vmax.f32 %v1714_v32, 0.0  ;;  %2006 = vmatmul.mubr.bf16.vlgmr.msra.gmra.mrb[84].mxu1 %v3468_v39 }
 0x370   :  { %2045 = vmatprep.mubr.bf16.mxu1 %v1968_v51 }
 0x371   :  { %v1918_v22 = vpack.c.bf16 %v1870_v2, %v1869_v56 }
 0x372   :  { %v1718_v34 = vpop.f32.mrb[76].mxu0 }
 0x373   :  { %v1719_v31 = vadd.f32 %v1718_v34, %v3469_v19  ;;  %v1720_v3 = vpop.f32.mrb[77].mxu0  ;;  %2231 = vmatpush3.bf16.msra.mxu1 %v1918_v22 }
 0x374   :  { %v1721_v20 = vpop.f32.mrb[78].mxu0  ;;  %2232 = vmatprep.subr.bf16.mxu1 %v3342_v15 }
 0x375   :  { %v1722_v7 = vadd.f32 %v1721_v20, %v3470_v18  ;;  %v1723_v41 = vpop.f32.mrb[79].mxu0  ;;  %v1871_v58 = vmax.f32 %v1719_v31, 0.0 }
 0x377   :  { %v1872_v29 = vmax.f32 %v1722_v7, 0.0 }
 0x379   :  { %v1919_v30 = vpack.c.bf16 %v1872_v29, %v1871_v58 }
 0x37a   :  { %v1726_v1 = vpop.f32.mrb[80].mxu0 }
 0x37b   :  { %v1727_v26 = vadd.f32 %v1726_v1, %v3471_v61  ;;  %v1728_v0 = vpop.f32.mrb[81].mxu0  ;;  %2233 = vmatpush3.bf16.msra.mxu1 %v1919_v30 }
 0x37c   :  { %v1729_v40 = vpop.f32.mrb[82].mxu0  ;;  %2234 = vmatprep.subr.bf16.mxu1 %v3350_v27  ;;  %v1967_v27 = vcombine.high %v3468_v39, %v3468_v39 }
 0x37d   :  { %v1730_v36 = vadd.f32 %v1729_v40, %v3472_v17  ;;  %v1731_v10 = vpop.f32.mrb[83].mxu0  ;;  %v1873_v44 = vmax.f32 %v1727_v26, 0.0 }
 0x37f   :  { %v1874_v63 = vmax.f32 %v1730_v36, 0.0 }
 0x381   :  { %v1920_v15 = vpack.c.bf16 %v1874_v63, %v1873_v44 }
 0x383   :  { %2235 = vmatpush3.bf16.msra.mxu1 %v1920_v15 }
 0x384   :  { %2236 = vmatprep.subr.bf16.mxu1 %v3356_v16 }
 0x387   :  { %2237 = vmatpush3.bf16.msra.mxu1 %v3473_v11 }
 0x388   :  { %2238 = vmatprep.subr.bf16.mxu1 %v3363_v21 }
 0x38b   :  { %2239 = vmatpush3.bf16.msra.mxu1 %v3304_v4 }
 0x38c   :  { %2240 = vmatprep.subr.bf16.mxu1 %v3370_v57  ;;  %v3474_v57 = vld [vmem:[#allocation18_spill] sm:$0xff] }
 0x38d   :  { %v1942_v45 = vsub.s32 0, %v3474_v57 }
 0x38f   :  { %2241 = vmatpush3.bf16.msra.mxu1 %v3314_v50  ;;  %v1938_v50 = vpop.permute.xlu0 %1937 }
 0x390   :  { %2242 = vmatprep.subr.bf16.mxu1 %v3377_v37  ;;  %v1943_v48 = vrot.slane %v1938_v50, %v1942_v45 }
 0x393   :  { %2243 = vmatpush3.bf16.msra.mxu1 %v3320_v6 }
 0x394   :  { %2244 = vmatprep.subr.bf16.mxu1 %v3384_v55 }
 0x397   :  { %2245 = vmatpush3.bf16.msra.mxu1 %v3326_v13 }
 0x39a   :  { %2046 = vmatmul.mubr.bf16.vlgmr.msra.gmra.mrb[88].mxu1 %v1967_v27 }
 0x442   :  { %v2224_v16 = vpop.f32.mrb[84].mxu1 }
 0x443   :  { %v2225_v21 = vpop.f32.mrb[85].mxu1 }
 0x444   :  { %v2226_v24 = vadd.f32 %v2225_v21, %v2224_v16  ;;  %v2227_v4 = vpop.f32.mrb[86].mxu1 }
 0x445   :  { %v2228_v60 = vpop.f32.mrb[87].mxu1 }
 0x446   :  { %v2008_v6 = vadd.f32 %v2226_v24, %v1943_v48 }
 0x46d   :  { %v2246_v37 = vpop.f32.mrb[88].mxu1 }
 0x46e   :  { %v2247_v43 = vpop.f32.mrb[89].mxu1 }
 0x46f   :  { %v2248_v62 = vadd.f32 %v2247_v43, %v2246_v37  ;;  %v2249_v55 = vpop.f32.mrb[90].mxu1 }
 0x470   :  { %v2250_v12 = vpop.f32.mrb[91].mxu1 }
 0x471   :  { %v2048_v35 = vadd.f32 %v2248_v62, %v2008_v6 }
 0x473   :  { %v2181_v38 = vmul.f32 -1.442695, %v2048_v35 }
 0x475   :  { %2459 = vpow2.f32 %v2181_v38 }
 0x47f   :  { %v2460_v13 = vpop.eup %2459 }
 0x480   :  { %v2056_v49 = vadd.f32 1.0, %v2460_v13 }
 0x482   :  { %2461 = vrcp.f32 %v2056_v49 }
 0x48c   :  { %v2462_v23 = vpop.eup %2461 }
 0x48d   :  { %2059 = vst [vmem:[#allocation3] sm:$0x1] %v2462_v23 }
 0x48e   :  { %2474 = shalt.err (!%p2471_p4)
}
 0x48f   :  { %s2475_s1 = scalar_lea.hbm %s3442_s9, 16 }
 0x490   :  { %p2476_p5 = scmp.ne.s32.totalorder %s3442_s9, %s2475_s1  ;;  %p2479_p6 = scmp.lt.u32.totalorder %s2475_s1, %s3442_s9 }
 0x492   :  { %p2481_p7 = pnand %p2479_p6, %p2476_p5 }
 0x494   :  { %2484 = shalt.err (!%p2481_p7)
}
 0x495   :  { %2069 = dma.vmem_to_hbm [thread:$0]  %s2067_s20, 16, %s3442_s9, [#allocation4]  }
 0x496   :  { %2485 = dma.done.wait [#allocation4], 16  }
 0x497   :  { %2486 = vsyncadd [#allocation4], 4294967280 }
 0x498   :  { %2073 = vsyncpa [#allocation4], 1 }

</bundles_post_ra>
